<compile_context>
chip_gen: v6e
topology: v6e:2x2x1
jax: 0.10.0
libtpu: 0.0.40
codegen_flags: <defaults>
</compile_context>

<pallas_src>
import functools

import jax
import jax.numpy as jnp
from jax import lax
from jax.experimental import pallas as pl
from jax.experimental.pallas import tpu as pltpu


# ----------------------------------------------------------------------------
# Pallas kernel: the full GraphTripleConvNet forward (all layers fused)
# ----------------------------------------------------------------------------
def gconv_net_kernel(oh_s_to_ref, oh_o_to_ref, oh_s_ot_ref, oh_o_ot_ref,
                     inv_cnt_ref, obj_ref, pred_ref,
                     w1_ref, b1_ref, w2_ref, b2_ref,
                     w3_ref, b3_ref, w4_ref, b4_ref,
                     new_obj_ref, new_pred_ref,
                     tcat_ref,
                     *, num_layers, H, D):
    # Edge-invariant constants: loaded once, reused every layer.
    oh_s_to = oh_s_to_ref[...]          # (T, O) bf16  -- gather orientation
    oh_o_to = oh_o_to_ref[...]
    oh_s_ot = oh_s_ot_ref[...]          # (O, T) bf16  -- scatter orientation
    oh_o_ot = oh_o_ot_ref[...]
    inv_cnt = inv_cnt_ref[...]          # (O, 1) f32   -- 1 / clamp(counts, 1)

    w1 = w1_ref[...]                    # (3D, H)      bf16
    b1 = b1_ref[...]                    # (1, H)       f32
    w2 = w2_ref[...]                    # (H, 2H+D)    bf16
    b2 = b2_ref[...]                    # (1, 2H+D)    f32
    w3 = w3_ref[...]                    # (H, H)       bf16
    b3 = b3_ref[...]                    # (1, H)       f32
    w4 = w4_ref[...]                    # (H, D)       bf16
    b4 = b4_ref[...]                    # (1, D)       f32

    obj = obj_ref[...]                  # (O, D) f32, carried across layers
    pred = pred_ref[...]                # (T, D) f32, carried across layers

    # num_layers is a small static int -> unrolled straight-line code.
    for _ in range(num_layers):
        obj_b = obj.astype(jnp.bfloat16)

        # Gather obj_vecs[s_idx] / obj_vecs[o_idx] via one-hot matmuls (exact),
        # assembling the concat([cur_s, pred, cur_o]) directly into a
        # lane-aligned VMEM slab so net1 layer 1 is a single K=3D matmul.
        tcat_ref[:, :D] = jnp.dot(
            oh_s_to, obj_b, preferred_element_type=jnp.float32
        ).astype(jnp.bfloat16)
        tcat_ref[:, D:2 * D] = pred.astype(jnp.bfloat16)
        tcat_ref[:, 2 * D:] = jnp.dot(
            oh_o_to, obj_b, preferred_element_type=jnp.float32
        ).astype(jnp.bfloat16)

        # net1 layer 1: Linear(3D -> H) + ReLU   (one (T,3D)@(3D,H) matmul)
        h1 = jnp.maximum(
            jnp.dot(tcat_ref[...], w1, preferred_element_type=jnp.float32) + b1,
            0.0)

        # net1 layer 2: Linear(H -> 2H+D) + ReLU (one matmul, columns sliced)
        t2 = jnp.maximum(
            jnp.dot(h1.astype(jnp.bfloat16), w2,
                    preferred_element_type=jnp.float32) + b2,
            0.0)
        new_s = t2[:, :H].astype(jnp.bfloat16)
        new_p = t2[:, H:H + D]                       # f32, new pred vecs
        new_o = t2[:, H + D:].astype(jnp.bfloat16)

        # 'avg' pooling: scatter-add over objects as (O,T)-oriented one-hot
        # matmuls (no transpose), then multiply by precomputed 1/counts.
        pooled = (jnp.dot(oh_s_ot, new_s, preferred_element_type=jnp.float32)
                  + jnp.dot(oh_o_ot, new_o, preferred_element_type=jnp.float32))
        pooled = pooled * inv_cnt

        # net2: Linear(H -> H) + ReLU, Linear(H -> D) + ReLU
        h2 = jnp.maximum(
            jnp.dot(pooled.astype(jnp.bfloat16), w3,
                    preferred_element_type=jnp.float32) + b3,
            0.0)
        obj = jnp.maximum(
            jnp.dot(h2.astype(jnp.bfloat16), w4,
                    preferred_element_type=jnp.float32) + b4,
            0.0)
        pred = new_p

    new_obj_ref[...] = obj
    new_pred_ref[...] = pred


# ----------------------------------------------------------------------------
# Wrapper: hoists edge-invariant constants and launches ONE fused kernel
# ----------------------------------------------------------------------------
def graph_triple_conv_net(params, obj_vecs, pred_vecs, edges, num_layers):
    """mode='recurrent': same GraphTripleConv applied num_layers times.

    NOTE: edge indices are assumed in-range [0, O). Out-of-range indices would
    silently contribute nothing (all-zero one-hot row) instead of erroring
    like PyTorch indexing.
    """
    O, D = obj_vecs.shape
    T = pred_vecs.shape[0]
    H = params['w3'].shape[0]

    # ---- edge-invariant constants, built once outside the kernel ----------
    obj_ids = jnp.arange(O, dtype=jnp.int32)
    s_idx = edges[:, 0].astype(jnp.int32)
    o_idx = edges[:, 1].astype(jnp.int32)
    oh_s_to = (s_idx[:, None] == obj_ids[None, :]).astype(jnp.bfloat16)  # (T,O)
    oh_o_to = (o_idx[:, None] == obj_ids[None, :]).astype(jnp.bfloat16)  # (T,O)
    oh_s_ot = (obj_ids[:, None] == s_idx[None, :]).astype(jnp.bfloat16)  # (O,T)
    oh_o_ot = (obj_ids[:, None] == o_idx[None, :]).astype(jnp.bfloat16)  # (O,T)
    counts = (jnp.sum(oh_s_to, axis=0, dtype=jnp.float32)
              + jnp.sum(oh_o_to, axis=0, dtype=jnp.float32))
    inv_cnt = (1.0 / jnp.maximum(counts, 1.0)).reshape(O, 1).astype(jnp.float32)

    # ---- weights in bf16 (f32 accumulation inside the kernel), biases f32 --
    w1 = params['w1'].astype(jnp.bfloat16)
    w2 = params['w2'].astype(jnp.bfloat16)
    w3 = params['w3'].astype(jnp.bfloat16)
    w4 = params['w4'].astype(jnp.bfloat16)

    inputs = (oh_s_to, oh_o_to, oh_s_ot, oh_o_ot, inv_cnt,
              obj_vecs.astype(jnp.float32), pred_vecs.astype(jnp.float32),
              w1, params['b1'], w2, params['b2'],
              w3, params['b3'], w4, params['b4'])

    in_specs = [pl.BlockSpec(x.shape, lambda i: (0, 0)) for x in inputs]
    out_specs = (pl.BlockSpec((O, D), lambda i: (0, 0)),
                 pl.BlockSpec((T, D), lambda i: (0, 0)))
    out_shape = (jax.ShapeDtypeStruct((O, D), jnp.float32),
                 jax.ShapeDtypeStruct((T, D), jnp.float32))

    kernel = functools.partial(gconv_net_kernel,
                               num_layers=num_layers, H=H, D=D)

    return pl.pallas_call(
        kernel,
        grid=(1,),
        in_specs=in_specs,
        out_specs=out_specs,
        out_shape=out_shape,
        scratch_shapes=[pltpu.VMEM((T, 3 * D), jnp.bfloat16)],
        compiler_params=pltpu.CompilerParams(
            dimension_semantics=("arbitrary",),
            vmem_limit_bytes=64 * 1024 * 1024),
    )(*inputs)


# ----------------------------------------------------------------------------
# Pure-JAX reference (index gather / scatter_add), mirroring the kernel's
# bf16-matmul / f32-accumulate numerics so the comparison is tight.
# ----------------------------------------------------------------------------
def _mm(a, b):
    return jnp.dot(a.astype(jnp.bfloat16), b.astype(jnp.bfloat16),
                   preferred_element_type=jnp.float32)


def gconv_ref(params, obj_vecs, pred_vecs, edges):
    O, D = obj_vecs.shape
    H = params['w3'].shape[0]
    s_idx = edges[:, 0]
    o_idx = edges[:, 1]

    obj_b = obj_vecs.astype(jnp.bfloat16).astype(jnp.float32)
    pred_b = pred_vecs.astype(jnp.bfloat16).astype(jnp.float32)
    t = jnp.concatenate([obj_b[s_idx], pred_b, obj_b[o_idx]], axis=1)
    h1 = jax.nn.relu(_mm(t, params['w1']) + params['b1'])
    t2 = jax.nn.relu(_mm(h1, params['w2']) + params['b2'])
    new_s = t2[:, :H]
    new_p = t2[:, H:H + D]
    new_o = t2[:, H + D:]

    new_s_b = new_s.astype(jnp.bfloat16).astype(jnp.float32)
    new_o_b = new_o.astype(jnp.bfloat16).astype(jnp.float32)
    pooled = (jnp.zeros((O, H), jnp.float32)
              .at[s_idx].add(new_s_b)
              .at[o_idx].add(new_o_b))
    counts = (jnp.zeros((O,), jnp.float32)
              .at[s_idx].add(1.0)
              .at[o_idx].add(1.0))
    pooled = pooled * (1.0 / jnp.maximum(counts, 1.0))[:, None]

    h2 = jax.nn.relu(_mm(pooled, params['w3']) + params['b3'])
    new_obj = jax.nn.relu(_mm(h2, params['w4']) + params['b4'])
    return new_obj, new_p


def graph_triple_conv_net_ref(params, obj_vecs, pred_vecs, edges, num_layers):
    for _ in range(num_layers):
        obj_vecs, pred_vecs = gconv_ref(params, obj_vecs, pred_vecs, edges)
    return obj_vecs, pred_vecs


# ----------------------------------------------------------------------------
# Deterministic parameter init (Kaiming-normal weights, as in _init_weights)
# Merged layouts: w1 (3D,H), w2 (H,2H+D) with columns [new_s | new_p | new_o].
# ----------------------------------------------------------------------------
def init_params(key, D, H):
    ks = jax.random.split(key, 8)

    def kaiming(k, fan_in, shape):
        return (jax.random.normal(k, shape, jnp.float32)
                * jnp.sqrt(2.0 / fan_in)).astype(jnp.float32)

    def bias(k, fan_in, n):
        b = 1.0 / jnp.sqrt(float(fan_in))
        return jax.random.uniform(k, (1, n), jnp.float32, -b, b)

    return dict(
        # net1: Linear(3D -> H), ReLU, Linear(H -> 2H+D), ReLU
        w1=kaiming(ks[0], 3 * D, (3 * D, H)),
        b1=bias(ks[1], 3 * D, H),
        w2=kaiming(ks[2], H, (H, 2 * H + D)),
        b2=bias(ks[3], H, 2 * H + D),
        # net2: Linear(H -> H), ReLU, Linear(H -> D), ReLU
        w3=kaiming(ks[4], H, (H, H)),
        b3=bias(ks[5], H, H),
        w4=kaiming(ks[6], H, (H, D)),
        b4=bias(ks[7], H, D),
    )


if __name__ == "__main__":
    key = jax.random.PRNGKey(0)
    k_obj, k_pred, k_edge, k_param = jax.random.split(key, 4)

    O, T = 16, 32          # objects, triples
    D, H = 128, 128        # input_dim (= output_dim), hidden_dim (lane-dense)
    num_layers = 3         # GraphTripleConvNet(mode='recurrent')

    obj_vecs = jax.random.normal(k_obj, (O, D), jnp.float32)
    pred_vecs = jax.random.normal(k_pred, (T, D), jnp.float32)
    edges = jax.random.randint(k_edge, (T, 2), 0, O, jnp.int32)

    params = init_params(k_param, D, H)

    out_obj, out_pred = graph_triple_conv_net(params, obj_vecs, pred_vecs,
                                              edges, num_layers)
    out_obj = jax.block_until_ready(out_obj)
    out_pred = jax.block_until_ready(out_pred)

    ref_obj, ref_pred = graph_triple_conv_net_ref(params, obj_vecs, pred_vecs,
                                                  edges, num_layers)

    assert out_obj.shape == (O, D) and out_pred.shape == (T, D)
    assert jnp.allclose(out_obj, ref_obj, rtol=2e-2, atol=2e-2)
    assert jnp.allclose(out_pred, ref_pred, rtol=2e-2, atol=2e-2)

    print("KERNEL_OK")
</pallas_src>

<mosaic_0001>
module attributes {stable_mosaic.version = 11 : i64} {
  func.func @gconv_net_kernel(%arg0: i32, %arg1: memref<32x16xbf16, #tpu.memory_space<vmem>>, %arg2: memref<32x16xbf16, #tpu.memory_space<vmem>>, %arg3: memref<16x32xbf16, #tpu.memory_space<vmem>>, %arg4: memref<16x32xbf16, #tpu.memory_space<vmem>>, %arg5: memref<16x1xf32, #tpu.memory_space<vmem>>, %arg6: memref<16x128xf32, #tpu.memory_space<vmem>>, %arg7: memref<32x128xf32, #tpu.memory_space<vmem>>, %arg8: memref<384x128xbf16, #tpu.memory_space<vmem>>, %arg9: memref<1x128xf32, #tpu.memory_space<vmem>>, %arg10: memref<128x384xbf16, #tpu.memory_space<vmem>>, %arg11: memref<1x384xf32, #tpu.memory_space<vmem>>, %arg12: memref<128x128xbf16, #tpu.memory_space<vmem>>, %arg13: memref<1x128xf32, #tpu.memory_space<vmem>>, %arg14: memref<128x128xbf16, #tpu.memory_space<vmem>>, %arg15: memref<1x128xf32, #tpu.memory_space<vmem>>, %arg16: memref<16x128xf32, #tpu.memory_space<vmem>>, %arg17: memref<32x128xf32, #tpu.memory_space<vmem>>, %arg18: memref<32x384xbf16, #tpu.memory_space<vmem>>) attributes {dimension_semantics = [#tpu.dimension_semantics<arbitrary>], iteration_bounds = array<i64: 1>, scalar_prefetch = 0 : i64, scratch_operands = 1 : i64, tpu.core_type = #tpu.core_type<tc>, window_params = [{pipeline_mode = #tpu.pipeline_mode<synchronous>, transform_indices = @transform_0, window_bounds = array<i64: 32, 16>}, {pipeline_mode = #tpu.pipeline_mode<synchronous>, transform_indices = @transform_1, window_bounds = array<i64: 32, 16>}, {pipeline_mode = #tpu.pipeline_mode<synchronous>, transform_indices = @transform_2, window_bounds = array<i64: 16, 32>}, {pipeline_mode = #tpu.pipeline_mode<synchronous>, transform_indices = @transform_3, window_bounds = array<i64: 16, 32>}, {pipeline_mode = #tpu.pipeline_mode<synchronous>, transform_indices = @transform_4, window_bounds = array<i64: 16, 1>}, {pipeline_mode = #tpu.pipeline_mode<synchronous>, transform_indices = @transform_5, window_bounds = array<i64: 16, 128>}, {pipeline_mode = #tpu.pipeline_mode<synchronous>, transform_indices = @transform_6, window_bounds = array<i64: 32, 128>}, {pipeline_mode = #tpu.pipeline_mode<synchronous>, transform_indices = @transform_7, window_bounds = array<i64: 384, 128>}, {pipeline_mode = #tpu.pipeline_mode<synchronous>, transform_indices = @transform_8, window_bounds = array<i64: 1, 128>}, {pipeline_mode = #tpu.pipeline_mode<synchronous>, transform_indices = @transform_9, window_bounds = array<i64: 128, 384>}, {pipeline_mode = #tpu.pipeline_mode<synchronous>, transform_indices = @transform_10, window_bounds = array<i64: 1, 384>}, {pipeline_mode = #tpu.pipeline_mode<synchronous>, transform_indices = @transform_11, window_bounds = array<i64: 128, 128>}, {pipeline_mode = #tpu.pipeline_mode<synchronous>, transform_indices = @transform_12, window_bounds = array<i64: 1, 128>}, {pipeline_mode = #tpu.pipeline_mode<synchronous>, transform_indices = @transform_13, window_bounds = array<i64: 128, 128>}, {pipeline_mode = #tpu.pipeline_mode<synchronous>, transform_indices = @transform_14, window_bounds = array<i64: 1, 128>}, {pipeline_mode = #tpu.pipeline_mode<synchronous>, transform_indices = @transform_15, window_bounds = array<i64: 16, 128>}, {pipeline_mode = #tpu.pipeline_mode<synchronous>, transform_indices = @transform_16, window_bounds = array<i64: 32, 128>}]} {
    %c0 = arith.constant 0 : index
    %c0_0 = arith.constant 0 : index
    %0 = vector.load %arg1[%c0, %c0_0] : memref<32x16xbf16, #tpu.memory_space<vmem>>, vector<32x16xbf16>
    %c0_1 = arith.constant 0 : index
    %c0_2 = arith.constant 0 : index
    %1 = vector.load %arg2[%c0_1, %c0_2] : memref<32x16xbf16, #tpu.memory_space<vmem>>, vector<32x16xbf16>
    %c0_3 = arith.constant 0 : index
    %c0_4 = arith.constant 0 : index
    %2 = vector.load %arg3[%c0_3, %c0_4] : memref<16x32xbf16, #tpu.memory_space<vmem>>, vector<16x32xbf16>
    %c0_5 = arith.constant 0 : index
    %c0_6 = arith.constant 0 : index
    %3 = vector.load %arg4[%c0_5, %c0_6] : memref<16x32xbf16, #tpu.memory_space<vmem>>, vector<16x32xbf16>
    %c0_7 = arith.constant 0 : index
    %c0_8 = arith.constant 0 : index
    %4 = vector.load %arg5[%c0_7, %c0_8] : memref<16x1xf32, #tpu.memory_space<vmem>>, vector<16x1xf32>
    %c0_9 = arith.constant 0 : index
    %c0_10 = arith.constant 0 : index
    %5 = vector.load %arg8[%c0_9, %c0_10] : memref<384x128xbf16, #tpu.memory_space<vmem>>, vector<384x128xbf16>
    %c0_11 = arith.constant 0 : index
    %c0_12 = arith.constant 0 : index
    %6 = vector.load %arg9[%c0_11, %c0_12] : memref<1x128xf32, #tpu.memory_space<vmem>>, vector<1x128xf32>
    %c0_13 = arith.constant 0 : index
    %c0_14 = arith.constant 0 : index
    %7 = vector.load %arg10[%c0_13, %c0_14] : memref<128x384xbf16, #tpu.memory_space<vmem>>, vector<128x384xbf16>
    %c0_15 = arith.constant 0 : index
    %c0_16 = arith.constant 0 : index
    %8 = vector.load %arg11[%c0_15, %c0_16] : memref<1x384xf32, #tpu.memory_space<vmem>>, vector<1x384xf32>
    %c0_17 = arith.constant 0 : index
    %c0_18 = arith.constant 0 : index
    %9 = vector.load %arg12[%c0_17, %c0_18] : memref<128x128xbf16, #tpu.memory_space<vmem>>, vector<128x128xbf16>
    %c0_19 = arith.constant 0 : index
    %c0_20 = arith.constant 0 : index
    %10 = vector.load %arg13[%c0_19, %c0_20] : memref<1x128xf32, #tpu.memory_space<vmem>>, vector<1x128xf32>
    %c0_21 = arith.constant 0 : index
    %c0_22 = arith.constant 0 : index
    %11 = vector.load %arg14[%c0_21, %c0_22] : memref<128x128xbf16, #tpu.memory_space<vmem>>, vector<128x128xbf16>
    %c0_23 = arith.constant 0 : index
    %c0_24 = arith.constant 0 : index
    %12 = vector.load %arg15[%c0_23, %c0_24] : memref<1x128xf32, #tpu.memory_space<vmem>>, vector<1x128xf32>
    %c0_25 = arith.constant 0 : index
    %c0_26 = arith.constant 0 : index
    %13 = vector.load %arg6[%c0_25, %c0_26] : memref<16x128xf32, #tpu.memory_space<vmem>>, vector<16x128xf32>
    %c0_27 = arith.constant 0 : index
    %c0_28 = arith.constant 0 : index
    %14 = vector.load %arg7[%c0_27, %c0_28] : memref<32x128xf32, #tpu.memory_space<vmem>>, vector<32x128xf32>
    %15 = arith.truncf %13 : vector<16x128xf32> to vector<16x128xbf16>
    %cst = arith.constant dense<0.000000e+00> : vector<32x128xf32>
    %16 = tpu.matmul %0, %15, %cst {dimension_numbers = #tpu.dot_dimension_numbers<[1], [0], [0], [1], [0, 0, 1, 1], [], []>} : vector<32x16xbf16>, vector<16x128xbf16>, vector<32x128xf32> -> vector<32x128xf32>
    %17 = arith.truncf %16 : vector<32x128xf32> to vector<32x128xbf16>
    %c0_29 = arith.constant 0 : index
    %c0_30 = arith.constant 0 : index
    %18 = vector.load %arg18[%c0_29, %c0_30] : memref<32x384xbf16, #tpu.memory_space<vmem>>, vector<32x128xbf16>
    tpu.vector_store %arg18[%c0_29, %c0_30], %17 {strides = array<i32>} : memref<32x384xbf16, #tpu.memory_space<vmem>>, vector<32x128xbf16>,
    %19 = arith.truncf %14 : vector<32x128xf32> to vector<32x128xbf16>
    %c0_31 = arith.constant 0 : index
    %c128 = arith.constant 128 : index
    %20 = vector.load %arg18[%c0_31, %c128] : memref<32x384xbf16, #tpu.memory_space<vmem>>, vector<32x128xbf16>
    tpu.vector_store %arg18[%c0_31, %c128], %19 {strides = array<i32>} : memref<32x384xbf16, #tpu.memory_space<vmem>>, vector<32x128xbf16>,
    %cst_32 = arith.constant dense<0.000000e+00> : vector<32x128xf32>
    %21 = tpu.matmul %1, %15, %cst_32 {dimension_numbers = #tpu.dot_dimension_numbers<[1], [0], [0], [1], [0, 0, 1, 1], [], []>} : vector<32x16xbf16>, vector<16x128xbf16>, vector<32x128xf32> -> vector<32x128xf32>
    %22 = arith.truncf %21 : vector<32x128xf32> to vector<32x128xbf16>
    %c0_33 = arith.constant 0 : index
    %c256 = arith.constant 256 : index
    %23 = vector.load %arg18[%c0_33, %c256] : memref<32x384xbf16, #tpu.memory_space<vmem>>, vector<32x128xbf16>
    tpu.vector_store %arg18[%c0_33, %c256], %22 {strides = array<i32>} : memref<32x384xbf16, #tpu.memory_space<vmem>>, vector<32x128xbf16>,
    %c0_34 = arith.constant 0 : index
    %c0_35 = arith.constant 0 : index
    %24 = vector.load %arg18[%c0_34, %c0_35] : memref<32x384xbf16, #tpu.memory_space<vmem>>, vector<32x384xbf16>
    %cst_36 = arith.constant dense<0.000000e+00> : vector<32x128xf32>
    %25 = tpu.matmul %24, %5, %cst_36 {dimension_numbers = #tpu.dot_dimension_numbers<[1], [0], [0], [1], [0, 0, 1, 1], [], []>} : vector<32x384xbf16>, vector<384x128xbf16>, vector<32x128xf32> -> vector<32x128xf32>
    %26 = vector.broadcast %6 : vector<1x128xf32> to vector<32x128xf32>
    %27 = arith.addf %25, %26 : vector<32x128xf32>
    %cst_37 = arith.constant 0.000000e+00 : f32
    %28 = vector.broadcast %cst_37 : f32 to vector<32x128xf32>
    %29 = arith.maximumf %27, %28 : vector<32x128xf32>
    %30 = arith.truncf %29 : vector<32x128xf32> to vector<32x128xbf16>
    %cst_38 = arith.constant dense<0.000000e+00> : vector<32x384xf32>
    %31 = tpu.matmul %30, %7, %cst_38 {dimension_numbers = #tpu.dot_dimension_numbers<[1], [0], [0], [1], [0, 0, 1, 1], [], []>} : vector<32x128xbf16>, vector<128x384xbf16>, vector<32x384xf32> -> vector<32x384xf32>
    %32 = vector.broadcast %8 : vector<1x384xf32> to vector<32x384xf32>
    %33 = arith.addf %31, %32 : vector<32x384xf32>
    %cst_39 = arith.constant 0.000000e+00 : f32
    %34 = vector.broadcast %cst_39 : f32 to vector<32x384xf32>
    %35 = arith.maximumf %33, %34 : vector<32x384xf32>
    %36 = vector.extract_strided_slice %35 {offsets = [0, 0], sizes = [32, 128], strides = [1, 1]} : vector<32x384xf32> to vector<32x128xf32>
    %37 = arith.truncf %36 : vector<32x128xf32> to vector<32x128xbf16>
    %38 = vector.extract_strided_slice %35 {offsets = [0, 128], sizes = [32, 128], strides = [1, 1]} : vector<32x384xf32> to vector<32x128xf32>
    %39 = vector.extract_strided_slice %35 {offsets = [0, 256], sizes = [32, 128], strides = [1, 1]} : vector<32x384xf32> to vector<32x128xf32>
    %40 = arith.truncf %39 : vector<32x128xf32> to vector<32x128xbf16>
    %cst_40 = arith.constant dense<0.000000e+00> : vector<16x128xf32>
    %41 = tpu.matmul %2, %37, %cst_40 {dimension_numbers = #tpu.dot_dimension_numbers<[1], [0], [0], [1], [0, 0, 1, 1], [], []>} : vector<16x32xbf16>, vector<32x128xbf16>, vector<16x128xf32> -> vector<16x128xf32>
    %cst_41 = arith.constant dense<0.000000e+00> : vector<16x128xf32>
    %42 = tpu.matmul %3, %40, %cst_41 {dimension_numbers = #tpu.dot_dimension_numbers<[1], [0], [0], [1], [0, 0, 1, 1], [], []>} : vector<16x32xbf16>, vector<32x128xbf16>, vector<16x128xf32> -> vector<16x128xf32>
    %43 = arith.addf %41, %42 : vector<16x128xf32>
    %44 = vector.broadcast %4 : vector<16x1xf32> to vector<16x128xf32>
    %45 = arith.mulf %43, %44 : vector<16x128xf32>
    %46 = arith.truncf %45 : vector<16x128xf32> to vector<16x128xbf16>
    %cst_42 = arith.constant dense<0.000000e+00> : vector<16x128xf32>
    %47 = tpu.matmul %46, %9, %cst_42 {dimension_numbers = #tpu.dot_dimension_numbers<[1], [0], [0], [1], [0, 0, 1, 1], [], []>} : vector<16x128xbf16>, vector<128x128xbf16>, vector<16x128xf32> -> vector<16x128xf32>
    %48 = vector.broadcast %10 : vector<1x128xf32> to vector<16x128xf32>
    %49 = arith.addf %47, %48 : vector<16x128xf32>
    %cst_43 = arith.constant 0.000000e+00 : f32
    %50 = vector.broadcast %cst_43 : f32 to vector<16x128xf32>
    %51 = arith.maximumf %49, %50 : vector<16x128xf32>
    %52 = arith.truncf %51 : vector<16x128xf32> to vector<16x128xbf16>
    %cst_44 = arith.constant dense<0.000000e+00> : vector<16x128xf32>
    %53 = tpu.matmul %52, %11, %cst_44 {dimension_numbers = #tpu.dot_dimension_numbers<[1], [0], [0], [1], [0, 0, 1, 1], [], []>} : vector<16x128xbf16>, vector<128x128xbf16>, vector<16x128xf32> -> vector<16x128xf32>
    %54 = vector.broadcast %12 : vector<1x128xf32> to vector<16x128xf32>
    %55 = arith.addf %53, %54 : vector<16x128xf32>
    %cst_45 = arith.constant 0.000000e+00 : f32
    %56 = vector.broadcast %cst_45 : f32 to vector<16x128xf32>
    %57 = arith.maximumf %55, %56 : vector<16x128xf32>
    %58 = arith.truncf %57 : vector<16x128xf32> to vector<16x128xbf16>
    %cst_46 = arith.constant dense<0.000000e+00> : vector<32x128xf32>
    %59 = tpu.matmul %0, %58, %cst_46 {dimension_numbers = #tpu.dot_dimension_numbers<[1], [0], [0], [1], [0, 0, 1, 1], [], []>} : vector<32x16xbf16>, vector<16x128xbf16>, vector<32x128xf32> -> vector<32x128xf32>
    %60 = arith.truncf %59 : vector<32x128xf32> to vector<32x128xbf16>
    %c0_47 = arith.constant 0 : index
    %c0_48 = arith.constant 0 : index
    %61 = vector.load %arg18[%c0_47, %c0_48] : memref<32x384xbf16, #tpu.memory_space<vmem>>, vector<32x128xbf16>
    tpu.vector_store %arg18[%c0_47, %c0_48], %60 {strides = array<i32>} : memref<32x384xbf16, #tpu.memory_space<vmem>>, vector<32x128xbf16>,
    %62 = arith.truncf %38 : vector<32x128xf32> to vector<32x128xbf16>
    %c0_49 = arith.constant 0 : index
    %c128_50 = arith.constant 128 : index
    %63 = vector.load %arg18[%c0_49, %c128_50] : memref<32x384xbf16, #tpu.memory_space<vmem>>, vector<32x128xbf16>
    tpu.vector_store %arg18[%c0_49, %c128_50], %62 {strides = array<i32>} : memref<32x384xbf16, #tpu.memory_space<vmem>>, vector<32x128xbf16>,
    %cst_51 = arith.constant dense<0.000000e+00> : vector<32x128xf32>
    %64 = tpu.matmul %1, %58, %cst_51 {dimension_numbers = #tpu.dot_dimension_numbers<[1], [0], [0], [1], [0, 0, 1, 1], [], []>} : vector<32x16xbf16>, vector<16x128xbf16>, vector<32x128xf32> -> vector<32x128xf32>
    %65 = arith.truncf %64 : vector<32x128xf32> to vector<32x128xbf16>
    %c0_52 = arith.constant 0 : index
    %c256_53 = arith.constant 256 : index
    %66 = vector.load %arg18[%c0_52, %c256_53] : memref<32x384xbf16, #tpu.memory_space<vmem>>, vector<32x128xbf16>
    tpu.vector_store %arg18[%c0_52, %c256_53], %65 {strides = array<i32>} : memref<32x384xbf16, #tpu.memory_space<vmem>>, vector<32x128xbf16>,
    %c0_54 = arith.constant 0 : index
    %c0_55 = arith.constant 0 : index
    %67 = vector.load %arg18[%c0_54, %c0_55] : memref<32x384xbf16, #tpu.memory_space<vmem>>, vector<32x384xbf16>
    %cst_56 = arith.constant dense<0.000000e+00> : vector<32x128xf32>
    %68 = tpu.matmul %67, %5, %cst_56 {dimension_numbers = #tpu.dot_dimension_numbers<[1], [0], [0], [1], [0, 0, 1, 1], [], []>} : vector<32x384xbf16>, vector<384x128xbf16>, vector<32x128xf32> -> vector<32x128xf32>
    %69 = vector.broadcast %6 : vector<1x128xf32> to vector<32x128xf32>
    %70 = arith.addf %68, %69 : vector<32x128xf32>
    %cst_57 = arith.constant 0.000000e+00 : f32
    %71 = vector.broadcast %cst_57 : f32 to vector<32x128xf32>
    %72 = arith.maximumf %70, %71 : vector<32x128xf32>
    %73 = arith.truncf %72 : vector<32x128xf32> to vector<32x128xbf16>
    %cst_58 = arith.constant dense<0.000000e+00> : vector<32x384xf32>
    %74 = tpu.matmul %73, %7, %cst_58 {dimension_numbers = #tpu.dot_dimension_numbers<[1], [0], [0], [1], [0, 0, 1, 1], [], []>} : vector<32x128xbf16>, vector<128x384xbf16>, vector<32x384xf32> -> vector<32x384xf32>
    %75 = vector.broadcast %8 : vector<1x384xf32> to vector<32x384xf32>
    %76 = arith.addf %74, %75 : vector<32x384xf32>
    %cst_59 = arith.constant 0.000000e+00 : f32
    %77 = vector.broadcast %cst_59 : f32 to vector<32x384xf32>
    %78 = arith.maximumf %76, %77 : vector<32x384xf32>
    %79 = vector.extract_strided_slice %78 {offsets = [0, 0], sizes = [32, 128], strides = [1, 1]} : vector<32x384xf32> to vector<32x128xf32>
    %80 = arith.truncf %79 : vector<32x128xf32> to vector<32x128xbf16>
    %81 = vector.extract_strided_slice %78 {offsets = [0, 128], sizes = [32, 128], strides = [1, 1]} : vector<32x384xf32> to vector<32x128xf32>
    %82 = vector.extract_strided_slice %78 {offsets = [0, 256], sizes = [32, 128], strides = [1, 1]} : vector<32x384xf32> to vector<32x128xf32>
    %83 = arith.truncf %82 : vector<32x128xf32> to vector<32x128xbf16>
    %cst_60 = arith.constant dense<0.000000e+00> : vector<16x128xf32>
    %84 = tpu.matmul %2, %80, %cst_60 {dimension_numbers = #tpu.dot_dimension_numbers<[1], [0], [0], [1], [0, 0, 1, 1], [], []>} : vector<16x32xbf16>, vector<32x128xbf16>, vector<16x128xf32> -> vector<16x128xf32>
    %cst_61 = arith.constant dense<0.000000e+00> : vector<16x128xf32>
    %85 = tpu.matmul %3, %83, %cst_61 {dimension_numbers = #tpu.dot_dimension_numbers<[1], [0], [0], [1], [0, 0, 1, 1], [], []>} : vector<16x32xbf16>, vector<32x128xbf16>, vector<16x128xf32> -> vector<16x128xf32>
    %86 = arith.addf %84, %85 : vector<16x128xf32>
    %87 = vector.broadcast %4 : vector<16x1xf32> to vector<16x128xf32>
    %88 = arith.mulf %86, %87 : vector<16x128xf32>
    %89 = arith.truncf %88 : vector<16x128xf32> to vector<16x128xbf16>
    %cst_62 = arith.constant dense<0.000000e+00> : vector<16x128xf32>
    %90 = tpu.matmul %89, %9, %cst_62 {dimension_numbers = #tpu.dot_dimension_numbers<[1], [0], [0], [1], [0, 0, 1, 1], [], []>} : vector<16x128xbf16>, vector<128x128xbf16>, vector<16x128xf32> -> vector<16x128xf32>
    %91 = vector.broadcast %10 : vector<1x128xf32> to vector<16x128xf32>
    %92 = arith.addf %90, %91 : vector<16x128xf32>
    %cst_63 = arith.constant 0.000000e+00 : f32
    %93 = vector.broadcast %cst_63 : f32 to vector<16x128xf32>
    %94 = arith.maximumf %92, %93 : vector<16x128xf32>
    %95 = arith.truncf %94 : vector<16x128xf32> to vector<16x128xbf16>
    %cst_64 = arith.constant dense<0.000000e+00> : vector<16x128xf32>
    %96 = tpu.matmul %95, %11, %cst_64 {dimension_numbers = #tpu.dot_dimension_numbers<[1], [0], [0], [1], [0, 0, 1, 1], [], []>} : vector<16x128xbf16>, vector<128x128xbf16>, vector<16x128xf32> -> vector<16x128xf32>
    %97 = vector.broadcast %12 : vector<1x128xf32> to vector<16x128xf32>
    %98 = arith.addf %96, %97 : vector<16x128xf32>
    %cst_65 = arith.constant 0.000000e+00 : f32
    %99 = vector.broadcast %cst_65 : f32 to vector<16x128xf32>
    %100 = arith.maximumf %98, %99 : vector<16x128xf32>
    %101 = arith.truncf %100 : vector<16x128xf32> to vector<16x128xbf16>
    %cst_66 = arith.constant dense<0.000000e+00> : vector<32x128xf32>
    %102 = tpu.matmul %0, %101, %cst_66 {dimension_numbers = #tpu.dot_dimension_numbers<[1], [0], [0], [1], [0, 0, 1, 1], [], []>} : vector<32x16xbf16>, vector<16x128xbf16>, vector<32x128xf32> -> vector<32x128xf32>
    %103 = arith.truncf %102 : vector<32x128xf32> to vector<32x128xbf16>
    %c0_67 = arith.constant 0 : index
    %c0_68 = arith.constant 0 : index
    %104 = vector.load %arg18[%c0_67, %c0_68] : memref<32x384xbf16, #tpu.memory_space<vmem>>, vector<32x128xbf16>
    tpu.vector_store %arg18[%c0_67, %c0_68], %103 {strides = array<i32>} : memref<32x384xbf16, #tpu.memory_space<vmem>>, vector<32x128xbf16>,
    %105 = arith.truncf %81 : vector<32x128xf32> to vector<32x128xbf16>
    %c0_69 = arith.constant 0 : index
    %c128_70 = arith.constant 128 : index
    %106 = vector.load %arg18[%c0_69, %c128_70] : memref<32x384xbf16, #tpu.memory_space<vmem>>, vector<32x128xbf16>
    tpu.vector_store %arg18[%c0_69, %c128_70], %105 {strides = array<i32>} : memref<32x384xbf16, #tpu.memory_space<vmem>>, vector<32x128xbf16>,
    %cst_71 = arith.constant dense<0.000000e+00> : vector<32x128xf32>
    %107 = tpu.matmul %1, %101, %cst_71 {dimension_numbers = #tpu.dot_dimension_numbers<[1], [0], [0], [1], [0, 0, 1, 1], [], []>} : vector<32x16xbf16>, vector<16x128xbf16>, vector<32x128xf32> -> vector<32x128xf32>
    %108 = arith.truncf %107 : vector<32x128xf32> to vector<32x128xbf16>
    %c0_72 = arith.constant 0 : index
    %c256_73 = arith.constant 256 : index
    %109 = vector.load %arg18[%c0_72, %c256_73] : memref<32x384xbf16, #tpu.memory_space<vmem>>, vector<32x128xbf16>
    tpu.vector_store %arg18[%c0_72, %c256_73], %108 {strides = array<i32>} : memref<32x384xbf16, #tpu.memory_space<vmem>>, vector<32x128xbf16>,
    %c0_74 = arith.constant 0 : index
    %c0_75 = arith.constant 0 : index
    %110 = vector.load %arg18[%c0_74, %c0_75] : memref<32x384xbf16, #tpu.memory_space<vmem>>, vector<32x384xbf16>
    %cst_76 = arith.constant dense<0.000000e+00> : vector<32x128xf32>
    %111 = tpu.matmul %110, %5, %cst_76 {dimension_numbers = #tpu.dot_dimension_numbers<[1], [0], [0], [1], [0, 0, 1, 1], [], []>} : vector<32x384xbf16>, vector<384x128xbf16>, vector<32x128xf32> -> vector<32x128xf32>
    %112 = vector.broadcast %6 : vector<1x128xf32> to vector<32x128xf32>
    %113 = arith.addf %111, %112 : vector<32x128xf32>
    %cst_77 = arith.constant 0.000000e+00 : f32
    %114 = vector.broadcast %cst_77 : f32 to vector<32x128xf32>
    %115 = arith.maximumf %113, %114 : vector<32x128xf32>
    %116 = arith.truncf %115 : vector<32x128xf32> to vector<32x128xbf16>
    %cst_78 = arith.constant dense<0.000000e+00> : vector<32x384xf32>
    %117 = tpu.matmul %116, %7, %cst_78 {dimension_numbers = #tpu.dot_dimension_numbers<[1], [0], [0], [1], [0, 0, 1, 1], [], []>} : vector<32x128xbf16>, vector<128x384xbf16>, vector<32x384xf32> -> vector<32x384xf32>
    %118 = vector.broadcast %8 : vector<1x384xf32> to vector<32x384xf32>
    %119 = arith.addf %117, %118 : vector<32x384xf32>
    %cst_79 = arith.constant 0.000000e+00 : f32
    %120 = vector.broadcast %cst_79 : f32 to vector<32x384xf32>
    %121 = arith.maximumf %119, %120 : vector<32x384xf32>
    %122 = vector.extract_strided_slice %121 {offsets = [0, 0], sizes = [32, 128], strides = [1, 1]} : vector<32x384xf32> to vector<32x128xf32>
    %123 = arith.truncf %122 : vector<32x128xf32> to vector<32x128xbf16>
    %124 = vector.extract_strided_slice %121 {offsets = [0, 128], sizes = [32, 128], strides = [1, 1]} : vector<32x384xf32> to vector<32x128xf32>
    %125 = vector.extract_strided_slice %121 {offsets = [0, 256], sizes = [32, 128], strides = [1, 1]} : vector<32x384xf32> to vector<32x128xf32>
    %126 = arith.truncf %125 : vector<32x128xf32> to vector<32x128xbf16>
    %cst_80 = arith.constant dense<0.000000e+00> : vector<16x128xf32>
    %127 = tpu.matmul %2, %123, %cst_80 {dimension_numbers = #tpu.dot_dimension_numbers<[1], [0], [0], [1], [0, 0, 1, 1], [], []>} : vector<16x32xbf16>, vector<32x128xbf16>, vector<16x128xf32> -> vector<16x128xf32>
    %cst_81 = arith.constant dense<0.000000e+00> : vector<16x128xf32>
    %128 = tpu.matmul %3, %126, %cst_81 {dimension_numbers = #tpu.dot_dimension_numbers<[1], [0], [0], [1], [0, 0, 1, 1], [], []>} : vector<16x32xbf16>, vector<32x128xbf16>, vector<16x128xf32> -> vector<16x128xf32>
    %129 = arith.addf %127, %128 : vector<16x128xf32>
    %130 = vector.broadcast %4 : vector<16x1xf32> to vector<16x128xf32>
    %131 = arith.mulf %129, %130 : vector<16x128xf32>
    %132 = arith.truncf %131 : vector<16x128xf32> to vector<16x128xbf16>
    %cst_82 = arith.constant dense<0.000000e+00> : vector<16x128xf32>
    %133 = tpu.matmul %132, %9, %cst_82 {dimension_numbers = #tpu.dot_dimension_numbers<[1], [0], [0], [1], [0, 0, 1, 1], [], []>} : vector<16x128xbf16>, vector<128x128xbf16>, vector<16x128xf32> -> vector<16x128xf32>
    %134 = vector.broadcast %10 : vector<1x128xf32> to vector<16x128xf32>
    %135 = arith.addf %133, %134 : vector<16x128xf32>
    %cst_83 = arith.constant 0.000000e+00 : f32
    %136 = vector.broadcast %cst_83 : f32 to vector<16x128xf32>
    %137 = arith.maximumf %135, %136 : vector<16x128xf32>
    %138 = arith.truncf %137 : vector<16x128xf32> to vector<16x128xbf16>
    %cst_84 = arith.constant dense<0.000000e+00> : vector<16x128xf32>
    %139 = tpu.matmul %138, %11, %cst_84 {dimension_numbers = #tpu.dot_dimension_numbers<[1], [0], [0], [1], [0, 0, 1, 1], [], []>} : vector<16x128xbf16>, vector<128x128xbf16>, vector<16x128xf32> -> vector<16x128xf32>
    %140 = vector.broadcast %12 : vector<1x128xf32> to vector<16x128xf32>
    %141 = arith.addf %139, %140 : vector<16x128xf32>
    %cst_85 = arith.constant 0.000000e+00 : f32
    %142 = vector.broadcast %cst_85 : f32 to vector<16x128xf32>
    %143 = arith.maximumf %141, %142 : vector<16x128xf32>
    %c0_86 = arith.constant 0 : index
    %c0_87 = arith.constant 0 : index
    %144 = vector.load %arg16[%c0_86, %c0_87] : memref<16x128xf32, #tpu.memory_space<vmem>>, vector<16x128xf32>
    tpu.vector_store %arg16[%c0_86, %c0_87], %143 {strides = array<i32>} : memref<16x128xf32, #tpu.memory_space<vmem>>, vector<16x128xf32>,
    %c0_88 = arith.constant 0 : index
    %c0_89 = arith.constant 0 : index
    %145 = vector.load %arg17[%c0_88, %c0_89] : memref<32x128xf32, #tpu.memory_space<vmem>>, vector<32x128xf32>
    tpu.vector_store %arg17[%c0_88, %c0_89], %124 {strides = array<i32>} : memref<32x128xf32, #tpu.memory_space<vmem>>, vector<32x128xf32>,
    return
  }
  func.func @transform_0(%arg0: i32) -> (i32, i32) {
    %c0_i32 = arith.constant 0 : i32
    %c0_i32_0 = arith.constant 0 : i32
    %c0_i32_1 = arith.constant 0 : i32
    return %c0_i32, %c0_i32_0 : i32, i32
  }
  func.func @transform_1(%arg0: i32) -> (i32, i32) {
    %c0_i32 = arith.constant 0 : i32
    %c0_i32_0 = arith.constant 0 : i32
    %c0_i32_1 = arith.constant 0 : i32
    return %c0_i32, %c0_i32_0 : i32, i32
  }
  func.func @transform_2(%arg0: i32) -> (i32, i32) {
    %c0_i32 = arith.constant 0 : i32
    %c0_i32_0 = arith.constant 0 : i32
    %c0_i32_1 = arith.constant 0 : i32
    return %c0_i32, %c0_i32_0 : i32, i32
  }
  func.func @transform_3(%arg0: i32) -> (i32, i32) {
    %c0_i32 = arith.constant 0 : i32
    %c0_i32_0 = arith.constant 0 : i32
    %c0_i32_1 = arith.constant 0 : i32
    return %c0_i32, %c0_i32_0 : i32, i32
  }
  func.func @transform_4(%arg0: i32) -> (i32, i32) {
    %c0_i32 = arith.constant 0 : i32
    %c0_i32_0 = arith.constant 0 : i32
    %c0_i32_1 = arith.constant 0 : i32
    return %c0_i32, %c0_i32_0 : i32, i32
  }
  func.func @transform_5(%arg0: i32) -> (i32, i32) {
    %c0_i32 = arith.constant 0 : i32
    %c0_i32_0 = arith.constant 0 : i32
    %c0_i32_1 = arith.constant 0 : i32
    return %c0_i32, %c0_i32_0 : i32, i32
  }
  func.func @transform_6(%arg0: i32) -> (i32, i32) {
    %c0_i32 = arith.constant 0 : i32
    %c0_i32_0 = arith.constant 0 : i32
    %c0_i32_1 = arith.constant 0 : i32
    return %c0_i32, %c0_i32_0 : i32, i32
  }
  func.func @transform_7(%arg0: i32) -> (i32, i32) {
    %c0_i32 = arith.constant 0 : i32
    %c0_i32_0 = arith.constant 0 : i32
    %c0_i32_1 = arith.constant 0 : i32
    return %c0_i32, %c0_i32_0 : i32, i32
  }
  func.func @transform_8(%arg0: i32) -> (i32, i32) {
    %c0_i32 = arith.constant 0 : i32
    %c0_i32_0 = arith.constant 0 : i32
    %c0_i32_1 = arith.constant 0 : i32
    return %c0_i32, %c0_i32_0 : i32, i32
  }
  func.func @transform_9(%arg0: i32) -> (i32, i32) {
    %c0_i32 = arith.constant 0 : i32
    %c0_i32_0 = arith.constant 0 : i32
    %c0_i32_1 = arith.constant 0 : i32
    return %c0_i32, %c0_i32_0 : i32, i32
  }
  func.func @transform_10(%arg0: i32) -> (i32, i32) {
    %c0_i32 = arith.constant 0 : i32
    %c0_i32_0 = arith.constant 0 : i32
    %c0_i32_1 = arith.constant 0 : i32
    return %c0_i32, %c0_i32_0 : i32, i32
  }
  func.func @transform_11(%arg0: i32) -> (i32, i32) {
    %c0_i32 = arith.constant 0 : i32
    %c0_i32_0 = arith.constant 0 : i32
    %c0_i32_1 = arith.constant 0 : i32
    return %c0_i32, %c0_i32_0 : i32, i32
  }
  func.func @transform_12(%arg0: i32) -> (i32, i32) {
    %c0_i32 = arith.constant 0 : i32
    %c0_i32_0 = arith.constant 0 : i32
    %c0_i32_1 = arith.constant 0 : i32
    return %c0_i32, %c0_i32_0 : i32, i32
  }
  func.func @transform_13(%arg0: i32) -> (i32, i32) {
    %c0_i32 = arith.constant 0 : i32
    %c0_i32_0 = arith.constant 0 : i32
    %c0_i32_1 = arith.constant 0 : i32
    return %c0_i32, %c0_i32_0 : i32, i32
  }
  func.func @transform_14(%arg0: i32) -> (i32, i32) {
    %c0_i32 = arith.constant 0 : i32
    %c0_i32_0 = arith.constant 0 : i32
    %c0_i32_1 = arith.constant 0 : i32
    return %c0_i32, %c0_i32_0 : i32, i32
  }
  func.func @transform_15(%arg0: i32) -> (i32, i32) {
    %c0_i32 = arith.constant 0 : i32
    %c0_i32_0 = arith.constant 0 : i32
    %c0_i32_1 = arith.constant 0 : i32
    return %c0_i32, %c0_i32_0 : i32, i32
  }
  func.func @transform_16(%arg0: i32) -> (i32, i32) {
    %c0_i32 = arith.constant 0 : i32
    %c0_i32_0 = arith.constant 0 : i32
    %c0_i32_1 = arith.constant 0 : i32
    return %c0_i32, %c0_i32_0 : i32, i32
  }
}

</mosaic_0001>

<bundles_post_ra>
// kernel: tpu_custom_call.1
= control target key start
LH: loop header
LB: loop body
LE: loop exit
PB: predicated region body
PF: predicated region fallthrough
CT: control target
= control target key end

     0   :  { %s4407_s0 = inlined_call_operand.vmem [shape: bf16[32,16], index: 0, kind: input, shape index: {}]   ;;  %s4408_s1 = inlined_call_operand.vmem [shape: bf16[32,16], index: 1, kind: input, shape index: {}]   ;;  %s4409_s2 = inlined_call_operand.hbm [shape: bf16[16,32], index: 2, kind: input, shape index: {}]   ;;  %s4410_s3 = inlined_call_operand.hbm [shape: bf16[16,32], index: 3, kind: input, shape index: {}]   ;;  %s4411_s4 = inlined_call_operand.vmem [shape: f32[16,1], index: 4, kind: input, shape index: {}]   ;;  %s4412_s5 = inlined_call_operand.vmem [shape: f32[16,128], index: 5, kind: input, shape index: {}]   ;;  %s4413_s6 = inlined_call_operand.hbm [shape: f32[32,128], index: 6, kind: input, shape index: {}]   ;;  %s4414_s7 = inlined_call_operand.hbm [shape: bf16[384,128], index: 7, kind: input, shape index: {}]   ;;  %s4415_s8 = inlined_call_operand.vmem [shape: f32[1,128], index: 8, kind: input, shape index: {}]   ;;  %s4416_s9 = inlined_call_operand.hbm [shape: bf16[128,384], index: 9, kind: input, shape index: {}]   ;;  %s4417_s10 = inlined_call_operand.vmem [shape: f32[1,384], index: 10, kind: input, shape index: {}]   ;;  %s4418_s11 = inlined_call_operand.vmem [shape: bf16[128,128], index: 11, kind: input, shape index: {}]   ;;  %s4419_s12 = inlined_call_operand.vmem [shape: f32[1,128], index: 12, kind: input, shape index: {}]   ;;  %s4420_s13 = inlined_call_operand.hbm [shape: bf16[128,128], index: 13, kind: input, shape index: {}]   ;;  %s4421_s14 = inlined_call_operand.vmem [shape: f32[1,128], index: 14, kind: input, shape index: {}]   ;;  %s4422_s15 = inlined_call_operand.hbm [shape: f32[16,128], index: 15, kind: output, shape index: {0}]   ;;  %s4423_s16 = inlined_call_operand.hbm [shape: f32[32,128], index: 16, kind: output, shape index: {1}]  }
   0x1   :  { %4462 = sst [smem:[#allocation49_spill]] %s4407_s0 }
   0x2   :  { %22 = vsyncpa [#allocation4], 0 }
   0x3   :  { %23 = vsyncpa [#allocation7], 0 }
   0x4   :  { %24 = vsyncpa [#allocation10], 0 }
   0x5   :  { %25 = vsyncpa [#allocation13], 0 }
   0x6   :  { %26 = vsyncpa [#allocation5], 0 }
   0x7   :  { %27 = vsyncpa [#allocation16], 0  ;;  %s3660_s21 = smov [#allocation6]   ;;  %s3661_s23 = smov [#allocation9]  }
   0x8   :  { %s49_s22 = sshll.u32 %s3660_s21, 4  ;;  %s77_s24 = sshll.u32 %s3661_s23, 4  ;;  %s50_s22 = int_to_ptr.vmem [resolvable:$true] %s49_s22  ;;  %s78_s24 = int_to_ptr.vmem [resolvable:$true] %s77_s24 }
   0x9   :  { %s3496_s25 = scalar_lea.vmem %s50_s22, 128  ;;  %p3501_p1 = scmp.lt.s32.totalorder %s50_s22, %s50_s22 }
   0xa   :  { %p3497_p0 = scmp.ne.s32.totalorder %s50_s22, %s3496_s25  ;;  %p3502_p2 = scmp.lt.s32.totalorder %s3496_s25, %s3496_s25 }
   0xc   :  { %p3503_p3 = por %p3502_p2, %p3501_p1 }
   0xe   :  { %p3504_p4 = pnand %p3503_p3, %p3497_p0 }
  0x10   :  { %3507 = shalt.err (!%p3504_p4)
}
  0x11   :  { %s3662_s26 = smov 64   ;;  %s3663_s27 = smov 4  }
  0x12   :  { %55 = dma.hbm_to_vmem [thread:$0]  %s4410_s3, 128, %s50_s22, [#allocation7], %s3662_s26, %s3662_s26, %s3663_s27  }
  0x13   :  { %s3516_s30 = scalar_lea.vmem %s78_s24, 3072  ;;  %p3521_p6 = scmp.lt.s32.totalorder %s78_s24, %s78_s24 }
  0x14   :  { %p3517_p5 = scmp.ne.s32.totalorder %s78_s24, %s3516_s30  ;;  %p3522_p7 = scmp.lt.s32.totalorder %s3516_s30, %s3516_s30 }
  0x16   :  { %p3523_p8 = por %p3522_p7, %p3521_p6 }
  0x18   :  { %p3524_p9 = pnand %p3523_p8, %p3517_p5 }
  0x1a   :  { %3527 = shalt.err (!%p3524_p9)
}
  0x1b   :  { %83 = dma.hbm_to_vmem [thread:$0]  %s4414_s7, 3072, %s78_s24, [#allocation10], %s3662_s26, %s3662_s26, %s3663_s27  }
  0x1c   :  { %s3664_s18 = smov [#allocation3]   ;;  %s3665_s20 = smov [#allocation8]  }
  0x1d   :  { %s37_s19 = sshll.u32 %s3664_s18, 4  ;;  %s65_s21 = sshll.u32 %s3665_s20, 4  ;;  %s38_s19 = int_to_ptr.vmem [resolvable:$true] %s37_s19  ;;  %s66_s21 = int_to_ptr.vmem [resolvable:$true] %s65_s21 }
  0x1e   :  { %s3536_s3 = scalar_lea.vmem %s38_s19, 128  ;;  %p3541_p11 = scmp.lt.s32.totalorder %s38_s19, %s38_s19 }
  0x1f   :  { %p3537_p10 = scmp.ne.s32.totalorder %s38_s19, %s3536_s3  ;;  %p3542_p12 = scmp.lt.s32.totalorder %s3536_s3, %s3536_s3 }
  0x21   :  { %p3543_p13 = por %p3542_p12, %p3541_p11 }
  0x23   :  { %p3544_p0 = pnand %p3543_p13, %p3537_p10 }
  0x25   :  { %3547 = shalt.err (!%p3544_p0)
}
  0x26   :  { %43 = dma.hbm_to_vmem [thread:$0]  %s4409_s2, 128, %s38_s19, [#allocation4], %s3662_s26, %s3662_s26, %s3663_s27  }
  0x27   :  { %s3556_s7 = scalar_lea.vmem %s66_s21, 512  ;;  %p3561_p2 = scmp.lt.s32.totalorder %s66_s21, %s66_s21 }
  0x28   :  { %p3557_p1 = scmp.ne.s32.totalorder %s66_s21, %s3556_s7  ;;  %p3562_p3 = scmp.lt.s32.totalorder %s3556_s7, %s3556_s7 }
  0x2a   :  { %p3563_p4 = por %p3562_p3, %p3561_p2 }
  0x2c   :  { %p3564_p5 = pnand %p3563_p4, %p3557_p1 }
  0x2e   :  { %3567 = shalt.err (!%p3564_p5)
}
  0x2f   :  { %s3666_s24 = smov 128   ;;  %s3667_s25 = smov 8  }
  0x30   :  { %71 = dma.hbm_to_vmem [thread:$0]  %s4413_s6, 512, %s66_s21, [#allocation7], %s3666_s24, %s3666_s24, %s3667_s25  }
  0x31   :  { %s3668_s30 = smov [#allocation11]  }
  0x32   :  { %s91_s0 = sshll.u32 %s3668_s30, 4  ;;  %s92_s0 = int_to_ptr.vmem [resolvable:$true] %s91_s0 }
  0x33   :  { %s3576_s2 = scalar_lea.vmem %s92_s0, 3072  ;;  %p3581_p7 = scmp.lt.s32.totalorder %s92_s0, %s92_s0 }
  0x34   :  { %p3577_p6 = scmp.ne.s32.totalorder %s92_s0, %s3576_s2  ;;  %p3582_p8 = scmp.lt.s32.totalorder %s3576_s2, %s3576_s2 }
  0x36   :  { %p3583_p9 = por %p3582_p8, %p3581_p7 }
  0x38   :  { %p3584_p10 = pnand %p3583_p9, %p3577_p6 }
  0x3a   :  { %3587 = shalt.err (!%p3584_p10)
}
  0x3b   :  { %s3669_s17 = smov 192   ;;  %s3670_s18 = smov 12  }
  0x3c   :  { %97 = dma.hbm_to_vmem [thread:$0]  %s4416_s9, 3072, %s92_s0, [#allocation10], %s3669_s17, %s3669_s17, %s3670_s18  }
  0x3d   :  { %s3671_s3 = smov [#allocation12]  }
  0x3e   :  { %s109_s22 = sshll.u32 %s3671_s3, 4  ;;  %s110_s22 = int_to_ptr.vmem [resolvable:$true] %s109_s22 }
  0x3f   :  { %s3596_s6 = scalar_lea.vmem %s110_s22, 1024  ;;  %p3601_p12 = scmp.lt.s32.totalorder %s110_s22, %s110_s22 }
  0x40   :  { %p3597_p11 = scmp.ne.s32.totalorder %s110_s22, %s3596_s6  ;;  %p3602_p13 = scmp.lt.s32.totalorder %s3596_s6, %s3596_s6 }
  0x42   :  { %p3603_p0 = por %p3602_p13, %p3601_p12 }
  0x44   :  { %p3604_p1 = pnand %p3603_p0, %p3597_p11 }
  0x46   :  { %3607 = shalt.err (!%p3604_p1)
}
  0x47   :  { %115 = dma.hbm_to_vmem [thread:$0]  %s4420_s13, 1024, %s110_s22, [#allocation13], %s3662_s26, %s3662_s26, %s3663_s27  }
  0x48   :  { %3648 = dma.done.wait [#allocation4], 128  }
  0x49   :  { %3649 = vsyncadd [#allocation4], 4294967168 }
  0x4a   :  { %3650 = dma.done.wait [#allocation7], 640  }
  0x4b   :  { %3651 = vsyncadd [#allocation7], 4294966656 }
  0x4c   :  { %3652 = dma.done.wait [#allocation10], 6144  }
  0x4d   :  { %3653 = vsyncadd [#allocation10], 4294961152 }
  0x4e   :  { %3654 = dma.done.wait [#allocation13], 1024  }
  0x4f   :  { %3655 = vsyncadd [#allocation13], 4294966272  ;;  %v267_v0 = vld [vmem:[%s4412_s5] sm:$0xff]  ;;  %v268_v1 = vld [vmem:[%s4412_s5 + $0x8] sm:$0xff]  ;;  %s4463_s13 = sld [smem:[#allocation49_spill]]  ;;  %vm284_vm0 = vcmask 130048  }
  0x50   :  { %v273_v2 = vpack.c.bf16 %v268_v1, %v267_v0  ;;  %v3809_v4 = vld [vmem:[%s4408_s1] sm:$0xff]   ;;  %v3819_v6 = vld [vmem:[%s4408_s1 + $0x8] sm:$0xff]   ;;  %v3825_v7 = vld [vmem:[#allocation9 + $0x78] sm:$0xff]   ;;  %vm3674_vm1 = vmmov 0   ;;  %vm1026_vm2 = vcmask 261120   ;;  %s3675_s7 = smov [#allocation15]  }
  0x51   :  { %2979 = vmatprep.mubr.msk.bf16.mxu1 %vm284_vm0, %v3809_v4  ;;  %v3827_v8 = vld [vmem:[#allocation9 + $0xb8] sm:$0xff]   ;;  %v3837_v10 = vld [vmem:[#allocation9 + $0x70] sm:$0xff]   ;;  %v3847_v13 = vld [vmem:[#allocation9 + $0x68] sm:$0xff]   ;;  %s2537_s28 = sshll.u32 %s3675_s7, 4  ;;  %s2538_s28 = int_to_ptr.vmem [resolvable:$true] %s2537_s28 }
  0x52   :  { %2971 = vmatprep.subr.bf16.mxu0 %v273_v2  ;;  %2977 = vmatprep.subr.bf16.mxu1 %v273_v2  ;;  %v3833_v9 = vld [vmem:[#allocation9 + $0x38] sm:$0xff]   ;;  %v3841_v11 = vld [vmem:[#allocation9 + $0xb0] sm:$0xff]   ;;  %v3849_v14 = vld [vmem:[#allocation9 + $0xa8] sm:$0xff]   ;;  %s3608_s29 = scalar_lea.vmem %s2538_s28, 512  ;;  %p3613_p3 = scmp.lt.s32.totalorder %s2538_s28, %s2538_s28 }
  0x53   :  { %2972 = vmatpush3.bf16.msra.mxu0 %v273_v2  ;;  %2978 = vmatpush3.bf16.msra.mxu1 %v273_v2  ;;  %v3844_v12 = vld [vmem:[#allocation9 + $0x30] sm:$0xff]   ;;  %v3853_v15 = vld [vmem:[#allocation9 + $0x28] sm:$0xff]   ;;  %v3859_v16 = vld [vmem:[#allocation9 + $0x60] sm:$0xff]   ;;  %p3609_p2 = scmp.ne.s32.totalorder %s2538_s28, %s3608_s29  ;;  %p3614_p4 = scmp.lt.s32.totalorder %s3608_s29, %s3608_s29 }
  0x54   :  { %2743 = vmatprep.subr.bf16.mxu0 %v3825_v7  ;;  %2983 = vmatprep.subr.bf16.mxu1 %v3827_v8  ;;  %v3861_v17 = vld [vmem:[#allocation9 + $0xa0] sm:$0xff]   ;;  %v3869_v19 = vld [vmem:[#allocation9 + $0x58] sm:$0xff]   ;;  %v271_v21 = vld [vmem:[#allocation8 + $0x10] sm:$0xff] }
  0x55   :  { %v3804_v3 = vld [vmem:[%s4463_s13] sm:$0xff]   ;;  %v3814_v5 = vld [vmem:[%s4463_s13 + $0x8] sm:$0xff]   ;;  %v3871_v20 = vld [vmem:[#allocation9 + $0x98] sm:$0xff]   ;;  %v2707_v24 = vpack.c.bf16 %v271_v21, %v271_v21  ;;  %p3615_p5 = por %p3614_p4, %p3613_p3 }
  0x56   :  { %2973 = vmatprep.mubr.msk.bf16.mxu0 %vm284_vm0, %v3804_v3  ;;  %2980 = vmatmul.mubr.msk.bf16.vlgmr.msra.gmra.mxu1 %vm284_vm0, %v3819_v6  ;;  %v3863_v18 = vld [vmem:[#allocation9 + $0x20] sm:$0xff]   ;;  %v3873_v22 = vld [vmem:[#allocation9 + $0x18] sm:$0xff]   ;;  %v3879_v26 = vld [vmem:[#allocation9 + $0x50] sm:$0xff]  }
  0x57   :  { %2974 = vmatmul.mubr.msk.bf16.vlgmr.msra.gmra.mxu0 %vm284_vm0, %v3814_v5  ;;  %2984 = vmatpush3.bf16.msra.mxu1 %v3827_v8  ;;  %v269_v23 = vld [vmem:[#allocation8] sm:$0xff]  ;;  %378 = vst [vmem:[#allocation2 + $0x1c] sm:$0xf] %v2707_v24  ;;  %v3881_v27 = vld [vmem:[#allocation9 + $0x90] sm:$0xff]   ;;  %v272_v28 = vld [vmem:[#allocation8 + $0x18] sm:$0xff]  ;;  %p3616_p6 = pnand %p3615_p5, %p3609_p2 }
  0x58   :  { %2744 = vmatpush3.bf16.msra.mxu0 %v3833_v9  ;;  %2985 = vmatprep.subr.bf16.mxu1 %v3841_v11  ;;  %v2705_v25 = vpack.c.bf16 %v269_v23, %v269_v23  ;;  %v3883_v29 = vld [vmem:[#allocation9 + $0x10] sm:$0xff]   ;;  %v270_v30 = vld [vmem:[#allocation8 + $0x8] sm:$0xff]  ;;  %v2708_v31 = vpack.c.bf16 %v272_v28, %v272_v28  ;;  %v3895_v36 = vld [vmem:[#allocation9 + $0x40] sm:$0xff]  }
  0x59   :  { %2745 = vmatprep.subr.bf16.mxu0 %v3837_v10  ;;  %v2706_v32 = vpack.c.bf16 %v270_v30, %v270_v30  ;;  %v3889_v33 = vld [vmem:[#allocation9 + $0x48] sm:$0xff]   ;;  %v3897_v37 = vld [vmem:[#allocation9 + $0x80] sm:$0xff]   ;;  %v3912_v40 = vld [vmem:[#allocation11 + $0xb0] ss:$12 sps:$4 sm:$0xff]  }
  0x5a   :  { %376 = vst [vmem:[#allocation2 + $0x4] sm:$0xf] %v2705_v25  ;;  %379 = vst [vmem:[#allocation2 + $0x28] sm:$0xf] %v2708_v31  ;;  %v3891_v34 = vld [vmem:[#allocation9 + $0x88] sm:$0xff]   ;;  %v3903_v38 = vld [vmem:[#allocation9] sm:$0xff]  }
  0x5b   :  { %2986 = vmatpush3.bf16.msra.mxu1 %v3841_v11  ;;  %v3893_v35 = vld [vmem:[#allocation9 + $0x8] sm:$0xff]   ;;  %377 = vst [vmem:[#allocation2 + $0x10] sm:$0xf] %v2706_v32  ;;  %v3917_v61 = vld [vmem:[#allocation11 + $0x94] ss:$12 sps:$4 sm:$0xff]  }
  0x5c   :  { %2746 = vmatpush3.bf16.msra.mxu0 %v3844_v12  ;;  %2987 = vmatprep.subr.bf16.mxu1 %v3849_v14  ;;  %v3909_v39 = vld [vmem:[#allocation11 + $0xac] ss:$12 sps:$4 sm:$0xff]   ;;  %v3915_v57 = vld [vmem:[#allocation11 + $0xa8] ss:$12 sps:$4 sm:$0xff]   ;;  %v3922_v1 = vld [vmem:[#allocation11 + $0x90] ss:$12 sps:$4 sm:$0xff]  }
  0x5d   :  { %2747 = vmatprep.subr.bf16.mxu0 %v3847_v13  ;;  %v3919_v0 = vld [vmem:[#allocation11 + $0x98] ss:$12 sps:$4 sm:$0xff]   ;;  %v3926_v2 = vld [vmem:[#allocation11 + $0x7c] ss:$12 sps:$4 sm:$0xff]   ;;  %v3937_v25 = vld [vmem:[#allocation11 + $0x60] ss:$12 sps:$4 sm:$0xff]  }
  0x5e   :  { %v3930_v23 = vld [vmem:[#allocation11 + $0x78] ss:$12 sps:$4 sm:$0xff]   ;;  %4466 = vst [vmem:[#allocation25_spill] sm:$0xff] %v3937_v25  ;;  %v3943_v30 = vld [vmem:[#allocation11 + $0x80] ss:$12 sps:$4 sm:$0xff]  }
  0x5f   :  { %2988 = vmatpush3.bf16.msra.mxu1 %v3849_v14  ;;  %4464 = vst [vmem:[#allocation23_spill] sm:$0xff] %v3930_v23  ;;  %v3934_v24 = vld [vmem:[#allocation11 + $0x64] ss:$12 sps:$4 sm:$0xff]   ;;  %v3941_v28 = vld [vmem:[#allocation11 + $0x4c] ss:$12 sps:$4 sm:$0xff]  }
  0x60   :  { %2748 = vmatpush3.bf16.msra.mxu0 %v3853_v15  ;;  %2989 = vmatprep.subr.bf16.mxu1 %v3861_v17  ;;  %4465 = vst [vmem:[#allocation24_spill] sm:$0xff] %v3934_v24  ;;  %4467 = vst [vmem:[#allocation26_spill] sm:$0xff] %v3941_v28  ;;  %v3945_v31 = vld [vmem:[#allocation11 + $0x48] ss:$12 sps:$4 sm:$0xff]  }
  0x61   :  { %2749 = vmatprep.subr.bf16.mxu0 %v3859_v16  ;;  %v3346_v63 = vld [vmem:[#allocation2 + $0x1c] ss:$12 sps:$4 sm:$0xff]   ;;  %4468 = vst [vmem:[#allocation27_spill] sm:$0xff] %v3945_v31  ;;  %v3951_v32 = vld [vmem:[#allocation11 + $0x34] ss:$12 sps:$4 sm:$0xff]  }
  0x62   :  { %v3341_v58 = vld [vmem:[#allocation2 + $0x4] ss:$12 sps:$4 sm:$0xff]   ;;  %4469 = vst [vmem:[#allocation28_spill] sm:$0xff] %v3951_v32 }
  0x63   :  { %2990 = vmatpush3.bf16.msra.mxu1 %v3861_v17  ;;  %687 = vmatprep.mubr.bf16.mxu0 %v3341_v58 }
  0x64   :  { %2750 = vmatpush3.bf16.msra.mxu0 %v3863_v18  ;;  %2991 = vmatprep.subr.bf16.mxu1 %v3871_v20 }
  0x65   :  { %2751 = vmatprep.subr.bf16.mxu0 %v3869_v19 }
  0x67   :  { %2992 = vmatpush3.bf16.msra.mxu1 %v3871_v20 }
  0x68   :  { %2752 = vmatpush3.bf16.msra.mxu0 %v3873_v22  ;;  %2993 = vmatprep.subr.bf16.mxu1 %v3881_v27 }
  0x69   :  { %2753 = vmatprep.subr.bf16.mxu0 %v3879_v26 }
  0x6b   :  { %2994 = vmatpush3.bf16.msra.mxu1 %v3881_v27 }
  0x6c   :  { %2754 = vmatpush3.bf16.msra.mxu0 %v3883_v29  ;;  %2995 = vmatprep.subr.bf16.mxu1 %v3891_v34 }
  0x6d   :  { %2755 = vmatprep.subr.bf16.mxu0 %v3889_v33 }
  0x6f   :  { %2996 = vmatpush3.bf16.msra.mxu1 %v3891_v34 }
  0x70   :  { %2756 = vmatpush3.bf16.msra.mxu0 %v3893_v35  ;;  %2997 = vmatprep.subr.bf16.mxu1 %v3897_v37 }
  0x71   :  { %2757 = vmatprep.subr.bf16.mxu0 %v3895_v36 }
  0x73   :  { %2998 = vmatpush3.bf16.msra.mxu1 %v3897_v37 }
  0x74   :  { %2758 = vmatpush3.bf16.msra.mxu0 %v3903_v38  ;;  %3003 = vmatprep.subr.bf16.mxu1 %v3912_v40 }
  0x75   :  { %903 = vmatprep.subr.bf16.mxu0 %v3909_v39 }
 0x116   :  { %v2981_v42 = vpop.f32.mrf.mxu1 }
 0x117   :  { %v2975_v41 = vpop.f32.mrf.mxu0  ;;  %v2711_v44 = vpack.c.bf16 %v2981_v42, %v2981_v42  ;;  %v3955_v42 = vld [vmem:[#allocation11 + $0x30] ss:$12 sps:$4 sm:$0xff]  }
 0x118   :  { %v2703_v43 = vpack.c.bf16 %v2975_v41, %v2975_v41  ;;  %v430_v46 = vpop.f32.mrf.mxu1  ;;  %v3953_v41 = vld [vmem:[#allocation11 + $0x68] ss:$12 sps:$4 sm:$0xff]   ;;  %4471 = vst [vmem:[#allocation30_spill] sm:$0xff] %v3955_v42 }
 0x119   :  { %v325_v45 = vpop.f32.mrf.mxu0  ;;  %463 = vst [vmem:[#allocation2 + $0x20] sm:$0xf] %v2711_v44  ;;  %v2709_v48 = vpack.c.bf16 %v430_v46, %v430_v46  ;;  %4470 = vst [vmem:[#allocation29_spill] sm:$0xff] %v3953_v41  ;;  %v3963_v44 = vld [vmem:[#allocation11 + $0x50] ss:$12 sps:$4 sm:$0xff]  }
 0x11a   :  { %358 = vst [vmem:[#allocation2 + $0x18] sm:$0xf] %v2703_v43  ;;  %v2701_v47 = vpack.c.bf16 %v325_v45, %v325_v45  ;;  %v2982_v50 = vpop.f32.mrf.mxu1  ;;  %v3961_v43 = vld [vmem:[#allocation11 + $0x1c] ss:$12 sps:$4 sm:$0xff]   ;;  %4473 = vst [vmem:[#allocation32_spill] sm:$0xff] %v3963_v44 }
 0x11b   :  { %v2976_v49 = vpop.f32.mrf.mxu0  ;;  %461 = vst [vmem:[#allocation2 + $0x8] sm:$0xf] %v2709_v48  ;;  %v2712_v52 = vpack.c.bf16 %v2982_v50, %v2982_v50  ;;  %4472 = vst [vmem:[#allocation31_spill] sm:$0xff] %v3961_v43  ;;  %v3965_v45 = vld [vmem:[#allocation11 + $0x18] ss:$12 sps:$4 sm:$0xff]   ;;  %v4425_v50 = vmov 0  }
 0x11c   :  { %356 = vst [vmem:[#allocation2] sm:$0xf] %v2701_v47  ;;  %v2704_v51 = vpack.c.bf16 %v2976_v49, %v2976_v49  ;;  %v433_v54 = vpop.f32.mrf.mxu1  ;;  %4474 = vst [vmem:[#allocation33_spill] sm:$0xff] %v3965_v45  ;;  %v3971_v46 = vld [vmem:[#allocation11 + $0x4] ss:$12 sps:$4 sm:$0xff]   ;;  %3312 = vset.pattern.permute.xlu0 %v4425_v50 }
 0x11d   :  { %v328_v53 = vpop.f32.mrf.mxu0  ;;  %464 = vst [vmem:[#allocation2 + $0x2c] sm:$0xf] %v2712_v52  ;;  %v2710_v56 = vpack.c.bf16 %v433_v54, %v433_v54  ;;  %4475 = vst [vmem:[#allocation34_spill] sm:$0xff] %v3971_v46  ;;  %v3973_v47 = vld [vmem:[#allocation11 + $0x38] ss:$12 sps:$4 sm:$0xff]  }
 0x11e   :  { %359 = vst [vmem:[#allocation2 + $0x24] sm:$0xf] %v2704_v51  ;;  %v2702_v55 = vpack.c.bf16 %v328_v53, %v328_v53  ;;  %4476 = vst [vmem:[#allocation35_spill] sm:$0xff] %v3973_v47  ;;  %v3975_v48 = vld [vmem:[#allocation11] ss:$12 sps:$4 sm:$0xff]  }
 0x11f   :  { %462 = vst [vmem:[#allocation2 + $0x14] sm:$0xf] %v2710_v56  ;;  %4477 = vst [vmem:[#allocation36_spill] sm:$0xff] %v3975_v48  ;;  %v3981_v49 = vld [vmem:[#allocation11 + $0x20] ss:$12 sps:$4 sm:$0xff]  }
 0x120   :  { %357 = vst [vmem:[#allocation2 + $0xc] sm:$0xf] %v2702_v55  ;;  %4478 = vst [vmem:[#allocation37_spill] sm:$0xff] %v3981_v49  ;;  %v3987_v51 = vld [vmem:[#allocation11 + $0x8] ss:$12 sps:$4 sm:$0xff]  }
 0x121   :  { %4479 = vst [vmem:[#allocation38_spill] sm:$0xff] %v3987_v51  ;;  %v3994_v55 = vld [vmem:[%s4415_s8] ss:$0 sm:$0xff] }
 0x122   :  { %4480 = vst [vmem:[#allocation39_spill] sm:$0xff] %v3994_v55 }
 0x124   :  { %v3345_v62 = vld [vmem:[#allocation2 + $0x20] ss:$12 sps:$4 sm:$0xff]  }
 0x125   :  { %v3348_v21 = vld [vmem:[#allocation2 + $0x18] ss:$12 sps:$4 sm:$0xff]  }
 0x126   :  { %v3343_v59 = vld [vmem:[#allocation2 + $0x8] ss:$12 sps:$4 sm:$0xff]  }
 0x127   :  { %v3344_v60 = vld [vmem:[#allocation2] ss:$12 sps:$4 sm:$0xff]   ;;  %2999 = vmatprep.mubr.bf16.mxu1 %v3343_v59 }
 0x128   :  { %688 = vmatmul.mubr.bf16.vlgmr.msra.gmra.mxu0 %v3344_v60  ;;  %3000 = vmatmul.mubr.bf16.vlgmr.msra.gmra.mxu1 %v3345_v62 }
 0x129   :  { %695 = vmatprep.mubr.bf16.mxu0 %v3346_v63  ;;  %904 = vmatpush1.bf16.msra.mxu0 %v3915_v57 }
 0x12a   :  { %3004 = vmatpush3.bf16.msra.mxu1 %v3912_v40  ;;  %905 = vmatprep.subr.bf16.mxu0 %v3917_v61 }
 0x12b   :  { %3005 = vmatprep.subr.bf16.mxu1 %v3919_v0 }
 0x12d   :  { %906 = vmatpush1.bf16.msra.mxu0 %v3922_v1 }
 0x12e   :  { %3006 = vmatpush3.bf16.msra.mxu1 %v3919_v0  ;;  %907 = vmatprep.subr.bf16.mxu0 %v3926_v2 }
 0x12f   :  { %3007 = vmatprep.subr.bf16.mxu1 %v3943_v30 }
 0x130   :  { %696 = vmatmul.mubr.bf16.gmra.mxu0 %v3348_v21 }
 0x131   :  { %908 = vmatpush1.bf16.msra.mxu0 %v3930_v23  ;;  %935 = vmatprep.mubr.bf16.mxu0 %v4425_v50 }
 0x132   :  { %909 = vmatprep.subr.bf16.mxu0 %v3934_v24  ;;  %3008 = vmatpush3.bf16.msra.mxu1 %v3943_v30 }
 0x133   :  { %3009 = vmatprep.subr.bf16.mxu1 %v3953_v41 }
 0x135   :  { %910 = vmatpush1.bf16.msra.mxu0 %v3937_v25 }
 0x136   :  { %911 = vmatprep.subr.bf16.mxu0 %v3941_v28  ;;  %3010 = vmatpush3.bf16.msra.mxu1 %v3953_v41 }
 0x137   :  { %3011 = vmatprep.subr.bf16.mxu1 %v3963_v44 }
 0x139   :  { %912 = vmatpush1.bf16.msra.mxu0 %v3945_v31 }
 0x13a   :  { %913 = vmatprep.subr.bf16.mxu0 %v3951_v32  ;;  %3012 = vmatpush3.bf16.msra.mxu1 %v3963_v44 }
 0x13b   :  { %3013 = vmatprep.subr.bf16.mxu1 %v3973_v47 }
 0x13d   :  { %914 = vmatpush1.bf16.msra.mxu0 %v3955_v42 }
 0x13e   :  { %915 = vmatprep.subr.bf16.mxu0 %v3961_v43  ;;  %3014 = vmatpush3.bf16.msra.mxu1 %v3973_v47 }
 0x13f   :  { %3015 = vmatprep.subr.bf16.mxu1 %v3981_v49 }
 0x141   :  { %916 = vmatpush1.bf16.msra.mxu0 %v3965_v45 }
 0x142   :  { %917 = vmatprep.subr.bf16.mxu0 %v3971_v46  ;;  %3016 = vmatpush3.bf16.msra.mxu1 %v3981_v49 }
 0x143   :  { %3017 = vmatprep.subr.bf16.mxu1 %v3987_v51 }
 0x145   :  { %918 = vmatpush1.bf16.msra.mxu0 %v3975_v48 }
 0x146   :  { %3018 = vmatpush3.bf16.msra.mxu1 %v3987_v51 }
 0x1e8   :  { %v2759_v52 = vpop.f32.mrf.mxu0  ;;  %v3001_v53 = vpop.f32.mrf.mxu1 }
 0x1ea   :  { %v2760_v54 = vpop.f32.mrf.mxu0  ;;  %v738_v58 = vpop.f32.mrf.mxu1 }
 0x1eb   :  { %v2761_v56 = vadd.f32 %v2760_v54, %v2759_v52 }
 0x1ec   :  { %v2762_v59 = vpop.f32.mrf.mxu0  ;;  %v3002_v62 = vpop.f32.mrf.mxu1 }
 0x1ed   :  { %v690_v60 = vadd.f32 %v2761_v56, %v3994_v55 }
 0x1ee   :  { %v2763_v63 = vpop.f32.mrf.mxu0  ;;  %v741_v46 = vpop.f32.mrf.mxu1 }
 0x1ef   :  { %v2764_v21 = vadd.f32 %v2763_v63, %v2762_v59  ;;  %v739_v48 = vadd.f32 %v738_v58, %v690_v60  ;;  %v4481_v58 = vmov 0  }
 0x1f0   :  { %v2765_v50 = vpop.f32.mrf.mxu0 }
 0x1f1   :  { %v693_v51 = vadd.f32 %v2764_v21, %v3994_v55  ;;  %v753_v47 = vmax.f32 %v739_v48, 0.0 }
 0x1f2   :  { %v2766_v45 = vpop.f32.mrf.mxu0 }
 0x1f3   :  { %v742_v49 = vadd.f32 %v741_v46, %v693_v51  ;;  %v2767_v43 = vadd.f32 %v2766_v45, %v2765_v50  ;;  %v4443_v45 = vmov 0.0  }
 0x1f4   :  { %v2768_v42 = vpop.f32.mrf.mxu0  ;;  %3023 = vmatprep.subr.bf16.mxu1 %v4443_v45  ;;  %3031 = vmatprep.subr.bf16.mxu0 %v4443_v45 }
 0x1f5   :  { %v754_v32 = vmax.f32 %v742_v49, 0.0  ;;  %v698_v52 = vadd.f32 %v2767_v43, %v3994_v55 }
 0x1f6   :  { %v2769_v54 = vpop.f32.mrf.mxu0 }
 0x1f7   :  { %v757_v31 = vpack.c.bf16 %v754_v32, %v753_v47  ;;  %v2770_v44 = vadd.f32 %v2769_v54, %v2768_v42  ;;  %v747_v56 = vadd.f32 %v3001_v53, %v698_v52  ;;  %v760_v32 = vlaneseq }
 0x1f9   :  { %v701_v28 = vadd.f32 %v2770_v44, %v3994_v55  ;;  %936 = vmatmul.mubr.bf16.vlgmr.msra.gmra.mxu0 %v757_v31  ;;  %3019 = vmatprep.mubr.bf16.mxu1 %v757_v31  ;;  %v755_v60 = vmax.f32 %v747_v56, 0.0  ;;  %v150_v31 = vld [vmem:[%s4411_s4 + $0x8] sm:$0xff]  ;;  %v761_v42 = vshrl.u32 %v760_v32, 7  ;;  %v232_v44 = vld [vmem:[%s4417_s10] sm:$0x7] }
 0x1fa   :  { %945 = vmatprep.mubr.bf16.mxu0 %v4481_v58 }
 0x1fb   :  { %v750_v59 = vadd.f32 %v3002_v62, %v701_v28  ;;  %v149_v28 = vld [vmem:[%s4411_s4] sm:$0xff]  ;;  %v766_v43 = vsub.s32 1, %v761_v42  ;;  %v770_v50 = vsub.s32 2, %v761_v42  ;;  %v762_v53 = vsub.s32 0, %v761_v42 }
 0x1fc   :  { %1122 = vperm.xlu0 %3312, %v149_v28  }
 0x1fd   :  { %v756_v63 = vmax.f32 %v750_v59, 0.0  ;;  %v4016_v47 = vrot.slane %v232_v44, %v766_v43  ;;  %v4019_v54 = vrot.slane %v232_v44, %v770_v50 }
 0x1ff   :  { %v758_v46 = vpack.c.bf16 %v756_v63, %v755_v60  ;;  %v4022_v60 = vrot.slane %v232_v44, %v762_v53 }
 0x200   :  { %1127 = vperm.xlu0 %3312, %v150_v31  }
 0x201   :  { %946 = vmatmul.mubr.bf16.gmra.mxu0 %v758_v46  ;;  %3020 = vmatmul.mubr.bf16.vlgmr.msra.gmra.mxu1 %v758_v46 }
 0x202   :  { %3027 = vmatprep.mubr.msk.bf16.mxu1 %vm3674_vm1, %v4443_v45  ;;  %3035 = vmatprep.mubr.msk.bf16.mxu0 %vm3674_vm1, %v4443_v45 }
 0x2b9   :  { %v937_v48 = vpop.f32.mrf.mxu0 }
 0x2bb   :  { %v939_v49 = vpop.f32.mrf.mxu0 }
 0x2bc   :  { %v940_v51 = vadd.f32 %v939_v49, %v4016_v47 }
 0x2bd   :  { %v941_v62 = vpop.f32.mrf.mxu0 }
 0x2be   :  { %v1006_v21 = vmax.f32 %v940_v51, 0.0 }
 0x2bf   :  { %v943_v52 = vpop.f32.mrf.mxu0 }
 0x2c0   :  { %v2717_v56 = vpack.c.bf16 %v1006_v21, %v1006_v21  ;;  %v944_v59 = vadd.f32 %v943_v52, %v4016_v47  ;;  %v942_v21 = vadd.f32 %v941_v62, %v4022_v60 }
 0x2c1   :  { %v947_v63 = vpop.f32.mrf.mxu0  ;;  %v3021_v46 = vpop.f32.mrf.mxu1 }
 0x2c2   :  { %1414 = vst [vmem:[#allocation2 + $0x4] sm:$0xf] %v2717_v56  ;;  %v1009_v28 = vmax.f32 %v944_v59, 0.0  ;;  %v948_v31 = vadd.f32 %v947_v63, %v4022_v60  ;;  %v999_v32 = vadd.f32 %v3021_v46, %v4019_v54  ;;  %v938_v56 = vadd.f32 %v937_v48, %v4022_v60 }
 0x2c3   :  { %v949_v43 = vpop.f32.mrf.mxu0  ;;  %v990_v42 = vpop.f32.mrf.mxu1 }
 0x2c4   :  { %v2718_v49 = vpack.c.bf16 %v1009_v28, %v1009_v28  ;;  %v950_v51 = vadd.f32 %v949_v43, %v4016_v47  ;;  %v1011_v59 = vmax.f32 %v948_v31, 0.0  ;;  %v1013_v63 = vmax.f32 %v999_v32, 0.0 }
 0x2c5   :  { %v951_v50 = vpop.f32.mrf.mxu0  ;;  %v3022_v45 = vpop.f32.mrf.mxu1  ;;  %v991_v46 = vadd.f32 %v990_v42, %v4019_v54  ;;  %v1005_v48 = vmax.f32 %v938_v56, 0.0  ;;  %v4482_v42 = vmov 0.0   ;;  %v4088_v56 = vld [vmem:[%s4418_s11 + $0x10] sm:$0xff]  }
 0x2c6   :  { %1415 = vst [vmem:[#allocation2 + $0x10] sm:$0xf] %v2718_v49  ;;  %v1012_v44 = vmax.f32 %v950_v51, 0.0  ;;  %v952_v53 = vadd.f32 %v951_v50, %v4022_v60  ;;  %v1002_v52 = vadd.f32 %v3022_v45, %v4019_v54  ;;  %v1008_v49 = vmax.f32 %v942_v21, 0.0  ;;  %v4038_v21 = vld [vmem:[#allocation3] sm:$0xff]   ;;  %4485 = vst [vmem:[#allocation42_spill] sm:$0xff] %v4088_v56 }
 0x2c7   :  { %v953_v55 = vpop.f32.mrf.mxu0  ;;  %v993_v28 = vpop.f32.mrf.mxu1  ;;  %v1007_v31 = vmax.f32 %v991_v46, 0.0  ;;  %v4105_v46 = vld [vmem:[#allocation12 + $0x38] sm:$0xff]  }
 0x2c8   :  { %v2719_v25 = vpack.c.bf16 %v1012_v44, %v1012_v44  ;;  %v1014_v43 = vmax.f32 %v952_v53, 0.0  ;;  %v1016_v41 = vmax.f32 %v1002_v52, 0.0  ;;  %v954_v24 = vadd.f32 %v953_v55, %v4016_v47  ;;  %v4036_v53 = vld [vmem:[#allocation6] sm:$0xff]  }
 0x2c9   :  { %v994_v62 = vadd.f32 %v993_v28, %v4019_v54  ;;  %v1017_v44 = vpack.c.bf16 %v1008_v49, %v1005_v48  ;;  %v4080_v52 = vld [vmem:[%s4418_s11 + $0x18] sm:$0xff]   ;;  %v4108_v28 = vld [vmem:[#allocation12 + $0x30] sm:$0xff]  }
 0x2ca   :  { %1416 = vst [vmem:[#allocation2 + $0x1c] sm:$0xf] %v2719_v25  ;;  %v1018_v51 = vpack.c.bf16 %v1014_v43, %v1011_v59  ;;  %v1020_v50 = vpack.c.bf16 %v1016_v41, %v1013_v63  ;;  %v1015_v45 = vmax.f32 %v954_v24, 0.0  ;;  %v4043_v24 = vld [vmem:[%s4418_s11 + $0x38] sm:$0xff]   ;;  %v4066_v25 = vld [vmem:[%s4418_s11 + $0x28] sm:$0xff]   ;;  %v4073_v41 = vld [vmem:[%s4418_s11 + $0x20] sm:$0xff]  }
 0x2cb   :  { %v1010_v23 = vmax.f32 %v994_v62, 0.0  ;;  %4483 = vst [vmem:[#allocation40_spill] sm:$0xff] %v4073_v41  ;;  %4484 = vst [vmem:[#allocation41_spill] sm:$0xff] %v4080_v52  ;;  %v4095_v59 = vld [vmem:[%s4418_s11 + $0x8] sm:$0xff]   ;;  %v4102_v63 = vld [vmem:[%s4418_s11] sm:$0xff]  }
 0x2cc   :  { %v2720_v32 = vpack.c.bf16 %v1015_v45, %v1015_v45  ;;  %3024 = vmatpush3.bf16.msra.mxu1 %v1020_v50  ;;  %3032 = vmatpush3.bf16.msra.mxu0 %v1018_v51  ;;  %4486 = vst [vmem:[#allocation43_spill] sm:$0xff] %v4095_v59  ;;  %4487 = vst [vmem:[#allocation44_spill] sm:$0xff] %v4102_v63  ;;  %v4112_v43 = vld [vmem:[#allocation12 + $0x28] sm:$0xff]   ;;  %v4116_v62 = vld [vmem:[#allocation12 + $0x20] sm:$0xff]   ;;  %v4125_v51 = vpop.permute.xlu0 %1122 }
 0x2cd   :  { %3025 = vmatprep.subr.bf16.mxu1 %v4482_v42  ;;  %3033 = vmatprep.subr.bf16.mxu0 %v4482_v42  ;;  %v1019_v55 = vpack.c.bf16 %v1010_v23, %v1007_v31  ;;  %v4055_v23 = vld [vmem:[%s4418_s11 + $0x30] sm:$0xff]   ;;  %4488 = vst [vmem:[#allocation45_spill] sm:$0xff] %v4112_v43  ;;  %4489 = vst [vmem:[#allocation46_spill] sm:$0xff] %v4116_v62  ;;  %v4120_v49 = vld [vmem:[#allocation12 + $0x18] sm:$0xff]  }
 0x2ce   :  { %1417 = vst [vmem:[#allocation2 + $0x28] sm:$0xf] %v2720_v32  ;;  %4490 = vst [vmem:[#allocation47_spill] sm:$0xff] %v4120_v49 }
 0x2d0   :  { %3026 = vmatpush3.bf16.msra.mxu1 %v1019_v55  ;;  %3034 = vmatpush3.bf16.msra.mxu0 %v1017_v44 }
 0x2d1   :  { %3039 = vmatprep.subr.bf16.mxu1 %v4482_v42  ;;  %3059 = vmatprep.subr.bf16.mxu0 %v4482_v42 }
 0x2d3   :  { %3028 = vmatmul.mubr.msk.bf16.vlgmr.msra.gmra.mxu1 %vm1026_vm2, %v4036_v53  ;;  %3036 = vmatmul.mubr.msk.bf16.vlgmr.msra.gmra.mxu0 %vm1026_vm2, %v4038_v21 }
 0x2d4   :  { %3040 = vmatpush3.bf16.msra.mxu1 %v4043_v24  ;;  %3055 = vmatprep.mubr.msk.bf16.mxu1 %vm3674_vm1, %v4482_v42 }
 0x2d5   :  { %3041 = vmatprep.subr.bf16.mxu1 %v4482_v42  ;;  %3075 = vmatprep.mubr.msk.bf16.mxu0 %vm3674_vm1, %v4482_v42 }
 0x2d6   :  { %3060 = vmatpush3.bf16.msra.mxu0 %v4105_v46 }
 0x2d7   :  { %3061 = vmatprep.subr.bf16.mxu0 %v4482_v42 }
 0x2d8   :  { %3042 = vmatpush3.bf16.msra.mxu1 %v4055_v23 }
 0x2d9   :  { %3043 = vmatprep.subr.bf16.mxu1 %v4482_v42 }
 0x2da   :  { %3062 = vmatpush3.bf16.msra.mxu0 %v4108_v28 }
 0x2db   :  { %3063 = vmatprep.subr.bf16.mxu0 %v4482_v42 }
 0x2dc   :  { %3044 = vmatpush3.bf16.msra.mxu1 %v4066_v25 }
 0x2dd   :  { %3045 = vmatprep.subr.bf16.mxu1 %v4482_v42 }
 0x2de   :  { %3064 = vmatpush3.bf16.msra.mxu0 %v4112_v43  ;;  %v4133_v43 = vld [vmem:[#allocation12 + $0x10] sm:$0xff]  }
 0x2df   :  { %3065 = vmatprep.subr.bf16.mxu0 %v4482_v42 }
 0x2e0   :  { %3046 = vmatpush3.bf16.msra.mxu1 %v4073_v41 }
 0x2e1   :  { %3047 = vmatprep.subr.bf16.mxu1 %v4482_v42 }
 0x2e2   :  { %3066 = vmatpush3.bf16.msra.mxu0 %v4116_v62 }
 0x2e3   :  { %3067 = vmatprep.subr.bf16.mxu0 %v4482_v42 }
 0x2e4   :  { %3048 = vmatpush3.bf16.msra.mxu1 %v4080_v52 }
 0x2e5   :  { %3049 = vmatprep.subr.bf16.mxu1 %v4482_v42 }
 0x2e6   :  { %3068 = vmatpush3.bf16.msra.mxu0 %v4120_v49 }
 0x2e7   :  { %3069 = vmatprep.subr.bf16.mxu0 %v4482_v42 }
 0x2e8   :  { %3050 = vmatpush3.bf16.msra.mxu1 %v4088_v56 }
 0x2e9   :  { %3051 = vmatprep.subr.bf16.mxu1 %v4482_v42 }
 0x2ea   :  { %3070 = vmatpush3.bf16.msra.mxu0 %v4133_v43 }
 0x2eb   :  { %3071 = vmatprep.subr.bf16.mxu0 %v4482_v42 }
 0x2ec   :  { %3052 = vmatpush3.bf16.msra.mxu1 %v4095_v59 }
 0x2ed   :  { %3053 = vmatprep.subr.bf16.mxu1 %v4482_v42 }
 0x2f0   :  { %3054 = vmatpush3.bf16.msra.mxu1 %v4102_v63  ;;  %v4127_v63 = vpop.permute.xlu0 %1127 }
 0x2f1   :  { %4491 = vst [vmem:[#allocation48_spill] sm:$0xff] %v4127_v63 }
 0x393   :  { %v1064_v50 = vpop.f32.mrf.mxu1  ;;  %v1113_v45 = vpop.f32.mrf.mxu0 }
 0x394   :  { %v1114_v32 = vadd.f32 %v1113_v45, %v1064_v50  ;;  %v4137_v50 = vld [vmem:[#allocation12 + $0x8] sm:$0xff]  }
 0x395   :  { %v3029_v48 = vpop.f32.mrf.mxu1  ;;  %v3037_v31 = vpop.f32.mrf.mxu0  ;;  %3072 = vmatpush3.bf16.msra.mxu0 %v4137_v50 }
 0x396   :  { %v1130_v62 = vmul.f32 %v4125_v51, %v1114_v32  ;;  %3073 = vmatprep.subr.bf16.mxu0 %v4482_v42 }
 0x397   :  { %v1067_v44 = vpop.f32.mrf.mxu1  ;;  %v1116_v55 = vpop.f32.mrf.mxu0 }
 0x398   :  { %v1117_v59 = vadd.f32 %v1116_v55, %v1067_v44  ;;  %v4156_v44 = vld [vmem:[%s4421_s14] ss:$0 sm:$0xff] }
 0x399   :  { %v3030_v56 = vpop.f32.mrf.mxu1  ;;  %v3038_v52 = vpop.f32.mrf.mxu0 }
 0x39a   :  { %v1131_v49 = vmul.f32 %v4127_v63, %v1117_v59  ;;  %v4141_v52 = vld [vmem:[#allocation12] sm:$0xff]  }
 0x39b   :  { %3074 = vmatpush3.bf16.msra.mxu0 %v4141_v52 }
 0x39c   :  { %v1132_v41 = vpack.c.bf16 %v1131_v49, %v1130_v62 }
 0x39e   :  { %3056 = vmatmul.mubr.bf16.vlgmr.msra.gmra.mxu1 %v1132_v41 }
 0x39f   :  { %3081 = vmatprep.mubr.msk.bf16.mxu1 %vm284_vm0, %v3804_v3  ;;  %v4147_v3 = vld [vmem:[%s4419_s12] ss:$0 sm:$0xff] }
 0x45e   :  { %v1221_v41 = vpop.f32.mrf.mxu1 }
 0x45f   :  { %v1222_v59 = vadd.f32 %v4147_v3, %v1221_v41 }
 0x460   :  { %v3057_v56 = vpop.f32.mrf.mxu1 }
 0x461   :  { %v1228_v48 = vmax.f32 %v1222_v59, 0.0 }
 0x462   :  { %v1224_v62 = vpop.f32.mrf.mxu1 }
 0x463   :  { %v1225_v49 = vadd.f32 %v4147_v3, %v1224_v62 }
 0x464   :  { %v3058_v45 = vpop.f32.mrf.mxu1 }
 0x465   :  { %v1229_v31 = vmax.f32 %v1225_v49, 0.0 }
 0x467   :  { %v1230_v32 = vpack.c.bf16 %v1229_v31, %v1228_v48  ;;  %v4506_v31 = vld [vmem:[#allocation38_spill] sm:$0xff] }
 0x469   :  { %3076 = vmatmul.mubr.bf16.vlgmr.msra.gmra.mxu0 %v1230_v32  ;;  %v4507_v32 = vld [vmem:[#allocation36_spill] sm:$0xff] }
 0x46a   :  { %3087 = vmatprep.mubr.msk.bf16.mxu0 %vm284_vm0, %v3809_v4 }
 0x529   :  { %v1319_v55 = vpop.f32.mrf.mxu0 }
 0x52a   :  { %v1320_v41 = vadd.f32 %v4156_v44, %v1319_v55 }
 0x52b   :  { %v3077_v56 = vpop.f32.mrf.mxu0 }
 0x52c   :  { %v1326_v59 = vmax.f32 %v1320_v41, 0.0 }
 0x52d   :  { %v1322_v63 = vpop.f32.mrf.mxu0 }
 0x52e   :  { %v1323_v62 = vadd.f32 %v4156_v44, %v1322_v63  ;;  %v4505_v63 = vld [vmem:[#allocation34_spill] sm:$0xff] }
 0x52f   :  { %v3078_v45 = vpop.f32.mrf.mxu0 }
 0x530   :  { %v1327_v49 = vmax.f32 %v1323_v62, 0.0 }
 0x532   :  { %v1328_v48 = vpack.c.bf16 %v1327_v49, %v1326_v59  ;;  %v4508_v49 = vld [vmem:[#allocation39_spill] sm:$0xff] }
 0x534   :  { %3079 = vmatprep.subr.bf16.mxu1 %v1328_v48  ;;  %3085 = vmatprep.subr.bf16.mxu0 %v1328_v48 }
 0x535   :  { %3080 = vmatpush3.bf16.msra.mxu1 %v1328_v48  ;;  %3086 = vmatpush3.bf16.msra.mxu0 %v1328_v48 }
 0x536   :  { %2821 = vmatprep.subr.bf16.mxu1 %v3825_v7  ;;  %3091 = vmatprep.subr.bf16.mxu0 %v3827_v8 }
 0x538   :  { %3082 = vmatmul.mubr.msk.bf16.vlgmr.msra.gmra.mxu1 %vm284_vm0, %v3814_v5  ;;  %3088 = vmatmul.mubr.msk.bf16.vlgmr.msra.gmra.mxu0 %vm284_vm0, %v3819_v6 }
 0x539   :  { %2822 = vmatpush3.bf16.msra.mxu1 %v3833_v9  ;;  %3092 = vmatpush3.bf16.msra.mxu0 %v3827_v8 }
 0x53a   :  { %2823 = vmatprep.subr.bf16.mxu1 %v3837_v10  ;;  %3093 = vmatprep.subr.bf16.mxu0 %v3841_v11 }
 0x53d   :  { %2824 = vmatpush3.bf16.msra.mxu1 %v3844_v12  ;;  %3094 = vmatpush3.bf16.msra.mxu0 %v3841_v11 }
 0x53e   :  { %2825 = vmatprep.subr.bf16.mxu1 %v3847_v13  ;;  %3095 = vmatprep.subr.bf16.mxu0 %v3849_v14 }
 0x541   :  { %2826 = vmatpush3.bf16.msra.mxu1 %v3853_v15  ;;  %3096 = vmatpush3.bf16.msra.mxu0 %v3849_v14 }
 0x542   :  { %2827 = vmatprep.subr.bf16.mxu1 %v3859_v16  ;;  %3097 = vmatprep.subr.bf16.mxu0 %v3861_v17 }
 0x545   :  { %2828 = vmatpush3.bf16.msra.mxu1 %v3863_v18  ;;  %3098 = vmatpush3.bf16.msra.mxu0 %v3861_v17 }
 0x546   :  { %2829 = vmatprep.subr.bf16.mxu1 %v3869_v19  ;;  %3099 = vmatprep.subr.bf16.mxu0 %v3871_v20 }
 0x549   :  { %2830 = vmatpush3.bf16.msra.mxu1 %v3873_v22  ;;  %3100 = vmatpush3.bf16.msra.mxu0 %v3871_v20  ;;  %v3399_v20 = vld [vmem:[#allocation2 + $0x4] ss:$12 sps:$4 sm:$0xff]  }
 0x54a   :  { %2831 = vmatprep.subr.bf16.mxu1 %v3879_v26  ;;  %3101 = vmatprep.subr.bf16.mxu0 %v3881_v27 }
 0x54b   :  { %1559 = vmatprep.mubr.bf16.mxu1 %v3399_v20 }
 0x54d   :  { %2832 = vmatpush3.bf16.msra.mxu1 %v3883_v29  ;;  %3102 = vmatpush3.bf16.msra.mxu0 %v3881_v27  ;;  %v3404_v29 = vld [vmem:[#allocation2 + $0x1c] ss:$12 sps:$4 sm:$0xff]  }
 0x54e   :  { %2833 = vmatprep.subr.bf16.mxu1 %v3889_v33  ;;  %3103 = vmatprep.subr.bf16.mxu0 %v3891_v34 }
 0x551   :  { %2834 = vmatpush3.bf16.msra.mxu1 %v3893_v35  ;;  %3104 = vmatpush3.bf16.msra.mxu0 %v3891_v34  ;;  %v4492_v34 = vld [vmem:[#allocation23_spill] sm:$0xff]  ;;  %v4493_v35 = vld [vmem:[#allocation24_spill] sm:$0xff] }
 0x552   :  { %2835 = vmatprep.subr.bf16.mxu1 %v3895_v36  ;;  %3105 = vmatprep.subr.bf16.mxu0 %v3897_v37  ;;  %v4494_v36 = vld [vmem:[#allocation29_spill] sm:$0xff] }
 0x555   :  { %2836 = vmatpush3.bf16.msra.mxu1 %v3903_v38  ;;  %3106 = vmatpush3.bf16.msra.mxu0 %v3897_v37  ;;  %v4495_v37 = vld [vmem:[#allocation25_spill] sm:$0xff]  ;;  %v4496_v38 = vld [vmem:[#allocation26_spill] sm:$0xff] }
 0x556   :  { %1631 = vmatprep.subr.bf16.mxu1 %v3909_v39  ;;  %3111 = vmatprep.subr.bf16.mxu0 %v3912_v40  ;;  %v4497_v39 = vld [vmem:[#allocation32_spill] sm:$0xff] }
 0x5f8   :  { %v3083_v4 = vpop.f32.mrf.mxu1  ;;  %v3089_v5 = vpop.f32.mrf.mxu0 }
 0x5f9   :  { %v2715_v6 = vpack.c.bf16 %v3083_v4, %v3083_v4  ;;  %v2723_v7 = vpack.c.bf16 %v3089_v5, %v3089_v5 }
 0x5fa   :  { %v1363_v8 = vpop.f32.mrf.mxu1  ;;  %v1452_v9 = vpop.f32.mrf.mxu0 }
 0x5fb   :  { %1396 = vst [vmem:[#allocation2 + $0x18] sm:$0xf] %v2715_v6  ;;  %1485 = vst [vmem:[#allocation2 + $0x20] sm:$0xf] %v2723_v7  ;;  %v2713_v10 = vpack.c.bf16 %v1363_v8, %v1363_v8  ;;  %v2721_v11 = vpack.c.bf16 %v1452_v9, %v1452_v9 }
 0x5fc   :  { %v3084_v12 = vpop.f32.mrf.mxu1  ;;  %v3090_v13 = vpop.f32.mrf.mxu0 }
 0x5fd   :  { %1394 = vst [vmem:[#allocation2] sm:$0xf] %v2713_v10  ;;  %1483 = vst [vmem:[#allocation2 + $0x8] sm:$0xf] %v2721_v11  ;;  %v2716_v14 = vpack.c.bf16 %v3084_v12, %v3084_v12  ;;  %v2724_v15 = vpack.c.bf16 %v3090_v13, %v3090_v13 }
 0x5fe   :  { %v1366_v16 = vpop.f32.mrf.mxu1  ;;  %v1455_v17 = vpop.f32.mrf.mxu0 }
 0x5ff   :  { %1397 = vst [vmem:[#allocation2 + $0x24] sm:$0xf] %v2716_v14  ;;  %1486 = vst [vmem:[#allocation2 + $0x2c] sm:$0xf] %v2724_v15  ;;  %v2714_v18 = vpack.c.bf16 %v1366_v16, %v1366_v16  ;;  %v2722_v19 = vpack.c.bf16 %v1455_v17, %v1455_v17 }
 0x601   :  { %1395 = vst [vmem:[#allocation2 + $0xc] sm:$0xf] %v2714_v18  ;;  %1484 = vst [vmem:[#allocation2 + $0x14] sm:$0xf] %v2722_v19 }
 0x606   :  { %v3403_v27 = vld [vmem:[#allocation2 + $0x20] ss:$12 sps:$4 sm:$0xff]   ;;  %v3406_v33 = vld [vmem:[#allocation2 + $0x18] ss:$12 sps:$4 sm:$0xff]  }
 0x608   :  { %v3401_v22 = vld [vmem:[#allocation2 + $0x8] ss:$12 sps:$4 sm:$0xff]   ;;  %v3402_v26 = vld [vmem:[#allocation2] ss:$12 sps:$4 sm:$0xff]  }
 0x609   :  { %3107 = vmatprep.mubr.bf16.mxu0 %v3401_v22  ;;  %1560 = vmatmul.mubr.bf16.vlgmr.msra.gmra.mxu1 %v3402_v26 }
 0x60a   :  { %3108 = vmatmul.mubr.bf16.vlgmr.msra.gmra.mxu0 %v3403_v27  ;;  %1567 = vmatprep.mubr.bf16.mxu1 %v3404_v29 }
 0x60b   :  { %1632 = vmatpush1.bf16.msra.mxu1 %v3915_v57  ;;  %3112 = vmatpush3.bf16.msra.mxu0 %v3912_v40  ;;  %v4498_v40 = vld [vmem:[#allocation27_spill] sm:$0xff]  ;;  %v4499_v57 = vld [vmem:[#allocation28_spill] sm:$0xff] }
 0x60c   :  { %1633 = vmatprep.subr.bf16.mxu1 %v3917_v61  ;;  %3113 = vmatprep.subr.bf16.mxu0 %v3919_v0  ;;  %v4500_v61 = vld [vmem:[#allocation35_spill] sm:$0xff] }
 0x60f   :  { %1634 = vmatpush1.bf16.msra.mxu1 %v3922_v1  ;;  %3114 = vmatpush3.bf16.msra.mxu0 %v3919_v0  ;;  %v4501_v0 = vld [vmem:[#allocation30_spill] sm:$0xff]  ;;  %v4502_v1 = vld [vmem:[#allocation31_spill] sm:$0xff] }
 0x610   :  { %1635 = vmatprep.subr.bf16.mxu1 %v3926_v2  ;;  %3115 = vmatprep.subr.bf16.mxu0 %v3943_v30  ;;  %v4503_v2 = vld [vmem:[#allocation37_spill] sm:$0xff] }
 0x611   :  { %1568 = vmatmul.mubr.bf16.gmra.mxu1 %v3406_v33 }
 0x612   :  { %1663 = vmatprep.mubr.bf16.mxu1 %v4481_v58 }
 0x613   :  { %1636 = vmatpush1.bf16.msra.mxu1 %v4492_v34  ;;  %3116 = vmatpush3.bf16.msra.mxu0 %v3943_v30  ;;  %v4504_v30 = vld [vmem:[#allocation33_spill] sm:$0xff] }
 0x614   :  { %1637 = vmatprep.subr.bf16.mxu1 %v4493_v35  ;;  %3117 = vmatprep.subr.bf16.mxu0 %v4494_v36 }
 0x617   :  { %1638 = vmatpush1.bf16.msra.mxu1 %v4495_v37  ;;  %3118 = vmatpush3.bf16.msra.mxu0 %v4494_v36 }
 0x618   :  { %1639 = vmatprep.subr.bf16.mxu1 %v4496_v38  ;;  %3119 = vmatprep.subr.bf16.mxu0 %v4497_v39 }
 0x61b   :  { %1640 = vmatpush1.bf16.msra.mxu1 %v4498_v40  ;;  %3120 = vmatpush3.bf16.msra.mxu0 %v4497_v39 }
 0x61c   :  { %1641 = vmatprep.subr.bf16.mxu1 %v4499_v57  ;;  %3121 = vmatprep.subr.bf16.mxu0 %v4500_v61 }
 0x61f   :  { %1642 = vmatpush1.bf16.msra.mxu1 %v4501_v0  ;;  %3122 = vmatpush3.bf16.msra.mxu0 %v4500_v61 }
 0x620   :  { %1643 = vmatprep.subr.bf16.mxu1 %v4502_v1  ;;  %3123 = vmatprep.subr.bf16.mxu0 %v4503_v2 }
 0x623   :  { %1644 = vmatpush1.bf16.msra.mxu1 %v4504_v30  ;;  %3124 = vmatpush3.bf16.msra.mxu0 %v4503_v2 }
 0x624   :  { %1645 = vmatprep.subr.bf16.mxu1 %v4505_v63  ;;  %3125 = vmatprep.subr.bf16.mxu0 %v4506_v31 }
 0x627   :  { %1646 = vmatpush1.bf16.msra.mxu1 %v4507_v32  ;;  %3126 = vmatpush3.bf16.msra.mxu0 %v4506_v31 }
 0x628   :  { %3131 = vmatprep.subr.bf16.mxu0 %v4482_v42  ;;  %3139 = vmatprep.subr.bf16.mxu1 %v4482_v42 }
 0x6c9   :  { %v2837_v55 = vpop.f32.mrf.mxu1 }
 0x6ca   :  { %v3109_v56 = vpop.f32.mrf.mxu0 }
 0x6cb   :  { %v2838_v41 = vpop.f32.mrf.mxu1 }
 0x6cc   :  { %v2839_v62 = vadd.f32 %v2838_v41, %v2837_v55  ;;  %v1610_v45 = vpop.f32.mrf.mxu0 }
 0x6cd   :  { %v2840_v59 = vpop.f32.mrf.mxu1 }
 0x6ce   :  { %v1562_v48 = vadd.f32 %v2839_v62, %v4508_v49  ;;  %v3110_v4 = vpop.f32.mrf.mxu0 }
 0x6cf   :  { %v2841_v5 = vpop.f32.mrf.mxu1 }
 0x6d0   :  { %v2842_v6 = vadd.f32 %v2841_v5, %v2840_v59  ;;  %v1611_v8 = vadd.f32 %v1610_v45, %v1562_v48  ;;  %v1613_v10 = vpop.f32.mrf.mxu0 }
 0x6d1   :  { %v2843_v7 = vpop.f32.mrf.mxu1 }
 0x6d2   :  { %v1565_v9 = vadd.f32 %v2842_v6, %v4508_v49  ;;  %v1625_v15 = vmax.f32 %v1611_v8, 0.0 }
 0x6d3   :  { %v2844_v11 = vpop.f32.mrf.mxu1 }
 0x6d4   :  { %v1614_v12 = vadd.f32 %v1613_v10, %v1565_v9  ;;  %v2845_v13 = vadd.f32 %v2844_v11, %v2843_v7 }
 0x6d5   :  { %v2846_v14 = vpop.f32.mrf.mxu1 }
 0x6d6   :  { %v1626_v16 = vmax.f32 %v1614_v12, 0.0  ;;  %v1570_v17 = vadd.f32 %v2845_v13, %v4508_v49 }
 0x6d7   :  { %v2847_v18 = vpop.f32.mrf.mxu1 }
 0x6d8   :  { %v1629_v19 = vpack.c.bf16 %v1626_v16, %v1625_v15  ;;  %v2848_v20 = vadd.f32 %v2847_v18, %v2846_v14  ;;  %v1619_v22 = vadd.f32 %v3109_v56, %v1570_v17 }
 0x6da   :  { %v1573_v26 = vadd.f32 %v2848_v20, %v4508_v49  ;;  %1664 = vmatmul.mubr.bf16.vlgmr.msra.gmra.mxu1 %v1629_v19  ;;  %3127 = vmatprep.mubr.bf16.mxu0 %v1629_v19  ;;  %v1627_v29 = vmax.f32 %v1619_v22, 0.0 }
 0x6db   :  { %1673 = vmatprep.mubr.bf16.mxu1 %v4481_v58 }
 0x6dc   :  { %v1622_v27 = vadd.f32 %v3110_v4, %v1573_v26 }
 0x6de   :  { %v1628_v33 = vmax.f32 %v1622_v27, 0.0 }
 0x6e0   :  { %v1630_v34 = vpack.c.bf16 %v1628_v33, %v1627_v29  ;;  %v4516_v33 = vld [vmem:[#allocation44_spill] sm:$0xff] }
 0x6e2   :  { %1674 = vmatmul.mubr.bf16.gmra.mxu1 %v1630_v34  ;;  %3128 = vmatmul.mubr.bf16.vlgmr.msra.gmra.mxu0 %v1630_v34 }
 0x6e3   :  { %3135 = vmatprep.mubr.msk.bf16.mxu0 %vm3674_vm1, %v4482_v42  ;;  %3143 = vmatprep.mubr.msk.bf16.mxu1 %vm3674_vm1, %v4482_v42 }
 0x79a   :  { %v1665_v35 = vpop.f32.mrf.mxu1 }
 0x79b   :  { %v1666_v4 = vadd.f32 %v1665_v35, %v4022_v60 }
 0x79c   :  { %v1667_v36 = vpop.f32.mrf.mxu1 }
 0x79d   :  { %v1668_v37 = vadd.f32 %v1667_v36, %v4016_v47  ;;  %v1733_v20 = vmax.f32 %v1666_v4, 0.0 }
 0x79e   :  { %v1669_v38 = vpop.f32.mrf.mxu1 }
 0x79f   :  { %v1734_v39 = vmax.f32 %v1668_v37, 0.0  ;;  %v1670_v45 = vadd.f32 %v1669_v38, %v4022_v60 }
 0x7a0   :  { %v1671_v40 = vpop.f32.mrf.mxu1 }
 0x7a1   :  { %v2729_v57 = vpack.c.bf16 %v1734_v39, %v1734_v39  ;;  %v1672_v61 = vadd.f32 %v1671_v40, %v4016_v47  ;;  %v1736_v15 = vmax.f32 %v1670_v45, 0.0 }
 0x7a2   :  { %v1675_v0 = vpop.f32.mrf.mxu1  ;;  %v3129_v1 = vpop.f32.mrf.mxu0 }
 0x7a3   :  { %2007 = vst [vmem:[#allocation2 + $0x4] sm:$0xf] %v2729_v57  ;;  %v1737_v2 = vmax.f32 %v1672_v61, 0.0  ;;  %v1676_v30 = vadd.f32 %v1675_v0, %v4022_v60  ;;  %v1727_v63 = vadd.f32 %v3129_v1, %v4019_v54  ;;  %v1745_v27 = vpack.c.bf16 %v1736_v15, %v1733_v20  ;;  %v4517_v1 = vld [vmem:[#allocation48_spill] sm:$0xff]  ;;  %v3423_v15 = vld [vmem:[#allocation9 + $0xb0] sm:$0xff]   ;;  %v3428_v20 = vld [vmem:[#allocation9 + $0x60] sm:$0xff]  }
 0x7a4   :  { %v1677_v31 = vpop.f32.mrf.mxu1  ;;  %v1718_v32 = vpop.f32.mrf.mxu0 }
 0x7a5   :  { %v2730_v55 = vpack.c.bf16 %v1737_v2, %v1737_v2  ;;  %v1678_v56 = vadd.f32 %v1677_v31, %v4016_v47  ;;  %v1739_v5 = vmax.f32 %v1676_v30, 0.0  ;;  %v1741_v6 = vmax.f32 %v1727_v63, 0.0 }
 0x7a6   :  { %v1679_v41 = vpop.f32.mrf.mxu1  ;;  %v3130_v62 = vpop.f32.mrf.mxu0  ;;  %v1719_v7 = vadd.f32 %v1718_v32, %v4019_v54 }
 0x7a7   :  { %2008 = vst [vmem:[#allocation2 + $0x10] sm:$0xf] %v2730_v55  ;;  %v1740_v59 = vmax.f32 %v1678_v56, 0.0  ;;  %v1680_v49 = vadd.f32 %v1679_v41, %v4022_v60  ;;  %v1730_v48 = vadd.f32 %v3130_v62, %v4019_v54 }
 0x7a8   :  { %v1681_v8 = vpop.f32.mrf.mxu1  ;;  %v1721_v9 = vpop.f32.mrf.mxu0  ;;  %v1735_v22 = vmax.f32 %v1719_v7, 0.0 }
 0x7a9   :  { %v2731_v10 = vpack.c.bf16 %v1740_v59, %v1740_v59  ;;  %v1742_v11 = vmax.f32 %v1680_v49, 0.0  ;;  %v1744_v12 = vmax.f32 %v1730_v48, 0.0  ;;  %v1682_v13 = vadd.f32 %v1681_v8, %v4016_v47  ;;  %v3416_v59 = vld [vmem:[%s4408_s1] sm:$0xff]  }
 0x7aa   :  { %v1722_v14 = vadd.f32 %v1721_v9, %v4019_v54 }
 0x7ab   :  { %2009 = vst [vmem:[#allocation2 + $0x1c] sm:$0xf] %v2731_v10  ;;  %v1746_v16 = vpack.c.bf16 %v1742_v11, %v1739_v5  ;;  %v1748_v17 = vpack.c.bf16 %v1744_v12, %v1741_v6  ;;  %v1743_v18 = vmax.f32 %v1682_v13, 0.0  ;;  %v3417_v10 = vld [vmem:[#allocation9 + $0x78] sm:$0xff]   ;;  %v3419_v12 = vld [vmem:[%s4463_s13 + $0x8] sm:$0xff]  }
 0x7ac   :  { %v1738_v19 = vmax.f32 %v1722_v14, 0.0  ;;  %v3418_v11 = vld [vmem:[#allocation9 + $0xb8] sm:$0xff]   ;;  %v3422_v14 = vld [vmem:[#allocation9 + $0x70] sm:$0xff]  }
 0x7ad   :  { %v2732_v26 = vpack.c.bf16 %v1743_v18, %v1743_v18  ;;  %3132 = vmatpush3.bf16.msra.mxu0 %v1748_v17  ;;  %3140 = vmatpush3.bf16.msra.mxu1 %v1746_v16  ;;  %v3421_v13 = vld [vmem:[#allocation9 + $0x38] sm:$0xff]   ;;  %v3424_v16 = vld [vmem:[#allocation9 + $0x30] sm:$0xff]   ;;  %v3425_v17 = vld [vmem:[#allocation9 + $0x68] sm:$0xff]  }
 0x7ae   :  { %3133 = vmatprep.subr.bf16.mxu0 %v4482_v42  ;;  %3141 = vmatprep.subr.bf16.mxu1 %v4482_v42  ;;  %v1747_v29 = vpack.c.bf16 %v1738_v19, %v1735_v22  ;;  %v3426_v18 = vld [vmem:[#allocation9 + $0xa8] sm:$0xff]   ;;  %v3429_v22 = vld [vmem:[#allocation9 + $0xa0] sm:$0xff]  }
 0x7af   :  { %2010 = vst [vmem:[#allocation2 + $0x28] sm:$0xf] %v2732_v26  ;;  %v3427_v19 = vld [vmem:[#allocation9 + $0x28] sm:$0xff]   ;;  %v3430_v26 = vld [vmem:[#allocation9 + $0x20] sm:$0xff]  }
 0x7b1   :  { %3134 = vmatpush3.bf16.msra.mxu0 %v1747_v29  ;;  %3142 = vmatpush3.bf16.msra.mxu1 %v1745_v27  ;;  %v3431_v27 = vld [vmem:[#allocation9 + $0x58] sm:$0xff]  }
 0x7b2   :  { %3147 = vmatprep.subr.bf16.mxu0 %v4482_v42  ;;  %3167 = vmatprep.subr.bf16.mxu1 %v4482_v42  ;;  %v3432_v29 = vld [vmem:[#allocation9 + $0x98] sm:$0xff]  }
 0x7b4   :  { %3136 = vmatmul.mubr.msk.bf16.vlgmr.msra.gmra.mxu0 %vm1026_vm2, %v4036_v53  ;;  %3144 = vmatmul.mubr.msk.bf16.vlgmr.msra.gmra.mxu1 %vm1026_vm2, %v4038_v21  ;;  %v4509_v53 = vld [vmem:[#allocation45_spill] sm:$0xff]  ;;  %v4510_v21 = vld [vmem:[#allocation40_spill] sm:$0xff] }
 0x7b5   :  { %3148 = vmatpush3.bf16.msra.mxu0 %v4043_v24  ;;  %3163 = vmatprep.mubr.msk.bf16.mxu0 %vm3674_vm1, %v4482_v42  ;;  %v4511_v24 = vld [vmem:[#allocation46_spill] sm:$0xff] }
 0x7b6   :  { %3149 = vmatprep.subr.bf16.mxu0 %v4482_v42  ;;  %3168 = vmatpush3.bf16.msra.mxu1 %v4105_v46  ;;  %v4513_v46 = vld [vmem:[#allocation47_spill] sm:$0xff] }
 0x7b7   :  { %3169 = vmatprep.subr.bf16.mxu1 %v4482_v42  ;;  %3183 = vmatprep.mubr.msk.bf16.mxu1 %vm3674_vm1, %v4482_v42 }
 0x7b9   :  { %3150 = vmatpush3.bf16.msra.mxu0 %v4055_v23  ;;  %v4512_v23 = vld [vmem:[#allocation41_spill] sm:$0xff] }
 0x7ba   :  { %3151 = vmatprep.subr.bf16.mxu0 %v4482_v42  ;;  %3170 = vmatpush3.bf16.msra.mxu1 %v4108_v28  ;;  %v4515_v28 = vld [vmem:[#allocation43_spill] sm:$0xff] }
 0x7bb   :  { %3171 = vmatprep.subr.bf16.mxu1 %v4482_v42 }
 0x7bd   :  { %3152 = vmatpush3.bf16.msra.mxu0 %v4066_v25  ;;  %v4514_v25 = vld [vmem:[#allocation42_spill] sm:$0xff] }
 0x7be   :  { %3153 = vmatprep.subr.bf16.mxu0 %v4482_v42  ;;  %3172 = vmatpush3.bf16.msra.mxu1 %v4509_v53  ;;  %v3433_v53 = vld [vmem:[#allocation9 + $0x18] sm:$0xff]  }
 0x7bf   :  { %3173 = vmatprep.subr.bf16.mxu1 %v4482_v42 }
 0x7c1   :  { %3154 = vmatpush3.bf16.msra.mxu0 %v4510_v21  ;;  %v3434_v21 = vld [vmem:[#allocation9 + $0x50] sm:$0xff]  }
 0x7c2   :  { %3155 = vmatprep.subr.bf16.mxu0 %v4482_v42  ;;  %3174 = vmatpush3.bf16.msra.mxu1 %v4511_v24  ;;  %v3435_v24 = vld [vmem:[#allocation9 + $0x90] sm:$0xff]  }
 0x7c3   :  { %3175 = vmatprep.subr.bf16.mxu1 %v4482_v42 }
 0x7c5   :  { %3156 = vmatpush3.bf16.msra.mxu0 %v4512_v23  ;;  %v3436_v23 = vld [vmem:[#allocation9 + $0x10] sm:$0xff]  }
 0x7c6   :  { %3157 = vmatprep.subr.bf16.mxu0 %v4482_v42  ;;  %3176 = vmatpush3.bf16.msra.mxu1 %v4513_v46  ;;  %v3437_v46 = vld [vmem:[#allocation9 + $0x48] sm:$0xff]  }
 0x7c7   :  { %3177 = vmatprep.subr.bf16.mxu1 %v4482_v42 }
 0x7c9   :  { %3158 = vmatpush3.bf16.msra.mxu0 %v4514_v25  ;;  %v3438_v25 = vld [vmem:[#allocation9 + $0x88] sm:$0xff]  }
 0x7ca   :  { %3159 = vmatprep.subr.bf16.mxu0 %v4482_v42  ;;  %3178 = vmatpush3.bf16.msra.mxu1 %v4133_v43 }
 0x7cb   :  { %3179 = vmatprep.subr.bf16.mxu1 %v4482_v42 }
 0x7cd   :  { %3160 = vmatpush3.bf16.msra.mxu0 %v4515_v28  ;;  %v3439_v28 = vld [vmem:[#allocation9 + $0x8] sm:$0xff]  }
 0x7ce   :  { %3161 = vmatprep.subr.bf16.mxu0 %v4482_v42  ;;  %3180 = vmatpush3.bf16.msra.mxu1 %v4137_v50 }
 0x7cf   :  { %3181 = vmatprep.subr.bf16.mxu1 %v4482_v42 }
 0x7d1   :  { %3162 = vmatpush3.bf16.msra.mxu0 %v4516_v33  ;;  %v3440_v33 = vld [vmem:[#allocation9 + $0x40] sm:$0xff]  }
 0x7d2   :  { %3182 = vmatpush3.bf16.msra.mxu1 %v4141_v52  ;;  %v3415_v52 = vld [vmem:[%s4463_s13] sm:$0xff]  }
 0x874   :  { %v1783_v34 = vpop.f32.mrf.mxu0  ;;  %v1824_v35 = vpop.f32.mrf.mxu1 }
 0x875   :  { %v1825_v38 = vadd.f32 %v1824_v35, %v1783_v34  ;;  %v3441_v34 = vld [vmem:[#allocation9 + $0x80] sm:$0xff]  }
 0x876   :  { %v3137_v36 = vpop.f32.mrf.mxu0  ;;  %v3145_v37 = vpop.f32.mrf.mxu1  ;;  %v3442_v35 = vld [vmem:[#allocation9] sm:$0xff]  }
 0x877   :  { %v1831_v0 = vmul.f32 %v1825_v38, %v4125_v51  ;;  %v3443_v36 = vld [vmem:[#allocation11 + $0xac] ss:$12 sps:$4 sm:$0xff]   ;;  %v3444_v37 = vld [vmem:[#allocation11 + $0xb0] ss:$12 sps:$4 sm:$0xff]  }
 0x878   :  { %v1786_v43 = vpop.f32.mrf.mxu0  ;;  %v1827_v39 = vpop.f32.mrf.mxu1 }
 0x879   :  { %v1828_v40 = vadd.f32 %v1827_v39, %v1786_v43 }
 0x87a   :  { %v3138_v57 = vpop.f32.mrf.mxu0  ;;  %v3146_v61 = vpop.f32.mrf.mxu1 }
 0x87b   :  { %v1832_v50 = vmul.f32 %v1828_v40, %v4517_v1 }
 0x87d   :  { %v1833_v2 = vpack.c.bf16 %v1832_v50, %v1831_v0 }
 0x87f   :  { %3164 = vmatmul.mubr.bf16.vlgmr.msra.gmra.mxu0 %v1833_v2 }
 0x880   :  { %3189 = vmatprep.mubr.msk.bf16.mxu0 %vm284_vm0, %v3415_v52 }
 0x93f   :  { %v1868_v30 = vpop.f32.mrf.mxu0 }
 0x940   :  { %v1869_v31 = vadd.f32 %v4147_v3, %v1868_v30 }
 0x941   :  { %v3165_v63 = vpop.f32.mrf.mxu0 }
 0x942   :  { %v1875_v41 = vmax.f32 %v1869_v31, 0.0 }
 0x943   :  { %v1871_v32 = vpop.f32.mrf.mxu0 }
 0x944   :  { %v1872_v55 = vadd.f32 %v4147_v3, %v1871_v32 }
 0x945   :  { %v3166_v56 = vpop.f32.mrf.mxu0 }
 0x946   :  { %v1876_v62 = vmax.f32 %v1872_v55, 0.0 }
 0x948   :  { %v1877_v45 = vpack.c.bf16 %v1876_v62, %v1875_v41  ;;  %v3409_v62 = vld [vmem:[#allocation2 + $0x4] ss:$12 sps:$4 sm:$0xff]  }
 0x94a   :  { %3184 = vmatmul.mubr.bf16.vlgmr.msra.gmra.mxu1 %v1877_v45 }
 0x94b   :  { %3195 = vmatprep.mubr.msk.bf16.mxu1 %vm284_vm0, %v3416_v59 }
 0xa0a   :  { %v1912_v49 = vpop.f32.mrf.mxu1 }
 0xa0b   :  { %v1913_v4 = vadd.f32 %v4156_v44, %v1912_v49  ;;  %v3412_v49 = vld [vmem:[#allocation2 + $0x1c] ss:$12 sps:$4 sm:$0xff]  }
 0xa0c   :  { %v3185_v48 = vpop.f32.mrf.mxu1 }
 0xa0d   :  { %v1919_v3 = vmax.f32 %v1913_v4, 0.0  ;;  %v3445_v48 = vld [vmem:[#allocation11 + $0xa8] ss:$12 sps:$4 sm:$0xff]  }
 0xa0e   :  { %v1915_v5 = vpop.f32.mrf.mxu1  ;;  %v3446_v4 = vld [vmem:[#allocation11 + $0x94] ss:$12 sps:$4 sm:$0xff]  }
 0xa0f   :  { %v1916_v6 = vadd.f32 %v4156_v44, %v1915_v5  ;;  %v3420_v44 = vld [vmem:[%s4408_s1 + $0x8] sm:$0xff]   ;;  %v3447_v5 = vld [vmem:[#allocation11 + $0x98] ss:$12 sps:$4 sm:$0xff]  }
 0xa10   :  { %v3186_v7 = vpop.f32.mrf.mxu1 }
 0xa11   :  { %v1920_v8 = vmax.f32 %v1916_v6, 0.0  ;;  %v3448_v7 = vld [vmem:[#allocation11 + $0x90] ss:$12 sps:$4 sm:$0xff]  }
 0xa13   :  { %v1921_v9 = vpack.c.bf16 %v1920_v8, %v1919_v3  ;;  %v3449_v3 = vld [vmem:[#allocation11 + $0x7c] ss:$12 sps:$4 sm:$0xff]   ;;  %v3450_v8 = vld [vmem:[#allocation11 + $0x80] ss:$12 sps:$4 sm:$0xff]  }
 0xa15   :  { %3187 = vmatprep.subr.bf16.mxu0 %v1921_v9  ;;  %3193 = vmatprep.subr.bf16.mxu1 %v1921_v9 }
 0xa16   :  { %3188 = vmatpush3.bf16.msra.mxu0 %v1921_v9  ;;  %3194 = vmatpush3.bf16.msra.mxu1 %v1921_v9  ;;  %v3451_v9 = vld [vmem:[#allocation11 + $0x78] ss:$12 sps:$4 sm:$0xff]  }
 0xa17   :  { %2899 = vmatprep.subr.bf16.mxu0 %v3417_v10  ;;  %3199 = vmatprep.subr.bf16.mxu1 %v3418_v11  ;;  %v3452_v10 = vld [vmem:[#allocation11 + $0x64] ss:$12 sps:$4 sm:$0xff]  }
 0xa19   :  { %3190 = vmatmul.mubr.msk.bf16.vlgmr.msra.gmra.mxu0 %vm284_vm0, %v3419_v12  ;;  %3196 = vmatmul.mubr.msk.bf16.vlgmr.msra.gmra.mxu1 %vm284_vm0, %v3420_v44  ;;  %v3454_v12 = vld [vmem:[#allocation11 + $0x60] ss:$12 sps:$4 sm:$0xff]  }
 0xa1a   :  { %2900 = vmatpush3.bf16.msra.mxu0 %v3421_v13  ;;  %3200 = vmatpush3.bf16.msra.mxu1 %v3418_v11  ;;  %v3453_v11 = vld [vmem:[#allocation11 + $0x68] ss:$12 sps:$4 sm:$0xff]   ;;  %v3455_v44 = vld [vmem:[#allocation11 + $0x4c] ss:$12 sps:$4 sm:$0xff]   ;;  %v3456_v13 = vld [vmem:[#allocation11 + $0x50] ss:$12 sps:$4 sm:$0xff]  }
 0xa1b   :  { %2901 = vmatprep.subr.bf16.mxu0 %v3422_v14  ;;  %3201 = vmatprep.subr.bf16.mxu1 %v3423_v15  ;;  %v3457_v14 = vld [vmem:[#allocation11 + $0x48] ss:$12 sps:$4 sm:$0xff]  }
 0xa1c   :  { %2152 = vmatprep.mubr.bf16.mxu0 %v3409_v62 }
 0xa1e   :  { %2902 = vmatpush3.bf16.msra.mxu0 %v3424_v16  ;;  %3202 = vmatpush3.bf16.msra.mxu1 %v3423_v15  ;;  %v3458_v15 = vld [vmem:[#allocation11 + $0x34] ss:$12 sps:$4 sm:$0xff]   ;;  %v3459_v16 = vld [vmem:[#allocation11 + $0x38] ss:$12 sps:$4 sm:$0xff]  }
 0xa1f   :  { %2903 = vmatprep.subr.bf16.mxu0 %v3425_v17  ;;  %3203 = vmatprep.subr.bf16.mxu1 %v3426_v18  ;;  %v3460_v17 = vld [vmem:[#allocation11 + $0x30] ss:$12 sps:$4 sm:$0xff]  }
 0xa22   :  { %2904 = vmatpush3.bf16.msra.mxu0 %v3427_v19  ;;  %3204 = vmatpush3.bf16.msra.mxu1 %v3426_v18  ;;  %v3461_v18 = vld [vmem:[#allocation11 + $0x1c] ss:$12 sps:$4 sm:$0xff]   ;;  %v3462_v19 = vld [vmem:[#allocation11 + $0x20] ss:$12 sps:$4 sm:$0xff]  }
 0xa23   :  { %2905 = vmatprep.subr.bf16.mxu0 %v3428_v20  ;;  %3205 = vmatprep.subr.bf16.mxu1 %v3429_v22  ;;  %v3463_v20 = vld [vmem:[#allocation11 + $0x18] ss:$12 sps:$4 sm:$0xff]  }
 0xa26   :  { %2906 = vmatpush3.bf16.msra.mxu0 %v3430_v26  ;;  %3206 = vmatpush3.bf16.msra.mxu1 %v3429_v22  ;;  %v3464_v22 = vld [vmem:[#allocation11 + $0x4] ss:$12 sps:$4 sm:$0xff]   ;;  %v3465_v26 = vld [vmem:[#allocation11 + $0x8] ss:$12 sps:$4 sm:$0xff]  }
 0xa27   :  { %2907 = vmatprep.subr.bf16.mxu0 %v3431_v27  ;;  %3207 = vmatprep.subr.bf16.mxu1 %v3432_v29  ;;  %v3466_v27 = vld [vmem:[#allocation11] ss:$12 sps:$4 sm:$0xff]  }
 0xa2a   :  { %2908 = vmatpush3.bf16.msra.mxu0 %v3433_v53  ;;  %3208 = vmatpush3.bf16.msra.mxu1 %v3432_v29 }
 0xa2b   :  { %2909 = vmatprep.subr.bf16.mxu0 %v3434_v21  ;;  %3209 = vmatprep.subr.bf16.mxu1 %v3435_v24 }
 0xa2e   :  { %2910 = vmatpush3.bf16.msra.mxu0 %v3436_v23  ;;  %3210 = vmatpush3.bf16.msra.mxu1 %v3435_v24 }
 0xa2f   :  { %2911 = vmatprep.subr.bf16.mxu0 %v3437_v46  ;;  %3211 = vmatprep.subr.bf16.mxu1 %v3438_v25 }
 0xa32   :  { %2912 = vmatpush3.bf16.msra.mxu0 %v3439_v28  ;;  %3212 = vmatpush3.bf16.msra.mxu1 %v3438_v25  ;;  %v3467_v25 = vld [vmem:[%s4415_s8] ss:$0 sm:$0xff] }
 0xa33   :  { %2913 = vmatprep.subr.bf16.mxu0 %v3440_v33  ;;  %3213 = vmatprep.subr.bf16.mxu1 %v3441_v34 }
 0xa36   :  { %2914 = vmatpush3.bf16.msra.mxu0 %v3442_v35  ;;  %3214 = vmatpush3.bf16.msra.mxu1 %v3441_v34 }
 0xa37   :  { %2224 = vmatprep.subr.bf16.mxu0 %v3443_v36  ;;  %3219 = vmatprep.subr.bf16.mxu1 %v3444_v37 }
 0xad9   :  { %v3191_v38 = vpop.f32.mrf.mxu0  ;;  %v3197_v43 = vpop.f32.mrf.mxu1 }
 0xada   :  { %v2727_v39 = vpack.c.bf16 %v3191_v38, %v3191_v38  ;;  %v2735_v40 = vpack.c.bf16 %v3197_v43, %v3197_v43 }
 0xadb   :  { %v1956_v57 = vpop.f32.mrf.mxu0  ;;  %v2045_v61 = vpop.f32.mrf.mxu1 }
 0xadc   :  { %1989 = vst [vmem:[#allocation2 + $0x18] sm:$0xf] %v2727_v39  ;;  %2078 = vst [vmem:[#allocation2 + $0x20] sm:$0xf] %v2735_v40  ;;  %v2725_v0 = vpack.c.bf16 %v1956_v57, %v1956_v57  ;;  %v2733_v50 = vpack.c.bf16 %v2045_v61, %v2045_v61 }
 0xadd   :  { %v3192_v2 = vpop.f32.mrf.mxu0  ;;  %v3198_v52 = vpop.f32.mrf.mxu1 }
 0xade   :  { %1987 = vst [vmem:[#allocation2] sm:$0xf] %v2725_v0  ;;  %2076 = vst [vmem:[#allocation2 + $0x8] sm:$0xf] %v2733_v50  ;;  %v2728_v30 = vpack.c.bf16 %v3192_v2, %v3192_v2  ;;  %v2736_v63 = vpack.c.bf16 %v3198_v52, %v3198_v52 }
 0xadf   :  { %v1959_v31 = vpop.f32.mrf.mxu0  ;;  %v2048_v32 = vpop.f32.mrf.mxu1 }
 0xae0   :  { %1990 = vst [vmem:[#allocation2 + $0x24] sm:$0xf] %v2728_v30  ;;  %2079 = vst [vmem:[#allocation2 + $0x2c] sm:$0xf] %v2736_v63  ;;  %v2726_v55 = vpack.c.bf16 %v1959_v31, %v1959_v31  ;;  %v2734_v56 = vpack.c.bf16 %v2048_v32, %v2048_v32 }
 0xae2   :  { %1988 = vst [vmem:[#allocation2 + $0xc] sm:$0xf] %v2726_v55  ;;  %2077 = vst [vmem:[#allocation2 + $0x14] sm:$0xf] %v2734_v56 }
 0xae7   :  { %v3411_v59 = vld [vmem:[#allocation2 + $0x20] ss:$12 sps:$4 sm:$0xff]   ;;  %v3414_v6 = vld [vmem:[#allocation2 + $0x18] ss:$12 sps:$4 sm:$0xff]  }
 0xae9   :  { %v3407_v41 = vld [vmem:[#allocation2] ss:$12 sps:$4 sm:$0xff]   ;;  %v3410_v45 = vld [vmem:[#allocation2 + $0x8] ss:$12 sps:$4 sm:$0xff]  }
 0xaea   :  { %3215 = vmatprep.mubr.bf16.mxu1 %v3410_v45  ;;  %2153 = vmatmul.mubr.bf16.vlgmr.msra.gmra.mxu0 %v3407_v41 }
 0xaeb   :  { %3216 = vmatmul.mubr.bf16.vlgmr.msra.gmra.mxu1 %v3411_v59  ;;  %2160 = vmatprep.mubr.bf16.mxu0 %v3412_v49 }
 0xaec   :  { %2225 = vmatpush1.bf16.msra.mxu0 %v3445_v48  ;;  %3220 = vmatpush3.bf16.msra.mxu1 %v3444_v37 }
 0xaed   :  { %2226 = vmatprep.subr.bf16.mxu0 %v3446_v4  ;;  %3221 = vmatprep.subr.bf16.mxu1 %v3447_v5 }
 0xaf0   :  { %2227 = vmatpush1.bf16.msra.mxu0 %v3448_v7  ;;  %3222 = vmatpush3.bf16.msra.mxu1 %v3447_v5 }
 0xaf1   :  { %2228 = vmatprep.subr.bf16.mxu0 %v3449_v3  ;;  %3223 = vmatprep.subr.bf16.mxu1 %v3450_v8 }
 0xaf2   :  { %2161 = vmatmul.mubr.bf16.gmra.mxu0 %v3414_v6 }
 0xaf3   :  { %2256 = vmatprep.mubr.bf16.mxu0 %v4481_v58 }
 0xaf4   :  { %2229 = vmatpush1.bf16.msra.mxu0 %v3451_v9  ;;  %3224 = vmatpush3.bf16.msra.mxu1 %v3450_v8 }
 0xaf5   :  { %2230 = vmatprep.subr.bf16.mxu0 %v3452_v10  ;;  %3225 = vmatprep.subr.bf16.mxu1 %v3453_v11 }
 0xaf8   :  { %2231 = vmatpush1.bf16.msra.mxu0 %v3454_v12  ;;  %3226 = vmatpush3.bf16.msra.mxu1 %v3453_v11 }
 0xaf9   :  { %2232 = vmatprep.subr.bf16.mxu0 %v3455_v44  ;;  %3227 = vmatprep.subr.bf16.mxu1 %v3456_v13 }
 0xafc   :  { %2233 = vmatpush1.bf16.msra.mxu0 %v3457_v14  ;;  %3228 = vmatpush3.bf16.msra.mxu1 %v3456_v13 }
 0xafd   :  { %2234 = vmatprep.subr.bf16.mxu0 %v3458_v15  ;;  %3229 = vmatprep.subr.bf16.mxu1 %v3459_v16 }
 0xb00   :  { %2235 = vmatpush1.bf16.msra.mxu0 %v3460_v17  ;;  %3230 = vmatpush3.bf16.msra.mxu1 %v3459_v16 }
 0xb01   :  { %2236 = vmatprep.subr.bf16.mxu0 %v3461_v18  ;;  %3231 = vmatprep.subr.bf16.mxu1 %v3462_v19 }
 0xb04   :  { %2237 = vmatpush1.bf16.msra.mxu0 %v3463_v20  ;;  %3232 = vmatpush3.bf16.msra.mxu1 %v3462_v19 }
 0xb05   :  { %2238 = vmatprep.subr.bf16.mxu0 %v3464_v22  ;;  %3233 = vmatprep.subr.bf16.mxu1 %v3465_v26 }
 0xb08   :  { %2239 = vmatpush1.bf16.msra.mxu0 %v3466_v27  ;;  %3234 = vmatpush3.bf16.msra.mxu1 %v3465_v26 }
 0xb09   :  { %3239 = vmatprep.subr.bf16.mxu1 %v4482_v42  ;;  %3247 = vmatprep.subr.bf16.mxu0 %v4482_v42 }
 0xbaa   :  { %v2915_v29 = vpop.f32.mrf.mxu0 }
 0xbab   :  { %v3217_v53 = vpop.f32.mrf.mxu1 }
 0xbac   :  { %v2916_v21 = vpop.f32.mrf.mxu0 }
 0xbad   :  { %v2917_v24 = vadd.f32 %v2916_v21, %v2915_v29  ;;  %v2203_v23 = vpop.f32.mrf.mxu1 }
 0xbae   :  { %v2918_v46 = vpop.f32.mrf.mxu0 }
 0xbaf   :  { %v2155_v28 = vadd.f32 %v3467_v25, %v2917_v24  ;;  %v3218_v33 = vpop.f32.mrf.mxu1 }
 0xbb0   :  { %v2919_v34 = vpop.f32.mrf.mxu0 }
 0xbb1   :  { %v2920_v35 = vadd.f32 %v2919_v34, %v2918_v46  ;;  %v2204_v37 = vadd.f32 %v2203_v23, %v2155_v28  ;;  %v2206_v43 = vpop.f32.mrf.mxu1 }
 0xbb2   :  { %v2921_v36 = vpop.f32.mrf.mxu0 }
 0xbb3   :  { %v2158_v38 = vadd.f32 %v3467_v25, %v2920_v35  ;;  %v2218_v0 = vmax.f32 %v2204_v37, 0.0  ;;  %v3470_v37 = vld [vmem:[%s4418_s11 + $0x38] sm:$0xff]  }
 0xbb4   :  { %v2922_v39 = vpop.f32.mrf.mxu0 }
 0xbb5   :  { %v2207_v40 = vadd.f32 %v2206_v43, %v2158_v38  ;;  %v2923_v57 = vadd.f32 %v2922_v39, %v2921_v36  ;;  %v3471_v38 = vld [vmem:[#allocation12 + $0x38] sm:$0xff]   ;;  %v3472_v43 = vld [vmem:[%s4418_s11 + $0x30] sm:$0xff]  }
 0xbb6   :  { %v2924_v61 = vpop.f32.mrf.mxu0  ;;  %v3473_v39 = vld [vmem:[#allocation12 + $0x30] sm:$0xff]  }
 0xbb7   :  { %v2219_v50 = vmax.f32 %v2207_v40, 0.0  ;;  %v2163_v2 = vadd.f32 %v3467_v25, %v2923_v57  ;;  %v3474_v40 = vld [vmem:[%s4418_s11 + $0x28] sm:$0xff]  }
 0xbb8   :  { %v2925_v52 = vpop.f32.mrf.mxu0  ;;  %v3475_v57 = vld [vmem:[#allocation12 + $0x28] sm:$0xff]  }
 0xbb9   :  { %v2222_v30 = vpack.c.bf16 %v2219_v50, %v2218_v0  ;;  %v2926_v63 = vadd.f32 %v2925_v52, %v2924_v61  ;;  %v2212_v31 = vadd.f32 %v3217_v53, %v2163_v2  ;;  %v3476_v61 = vld [vmem:[%s4418_s11 + $0x20] sm:$0xff]   ;;  %v3478_v50 = vld [vmem:[%s4418_s11 + $0x18] sm:$0xff]   ;;  %v3480_v52 = vld [vmem:[%s4418_s11 + $0x10] sm:$0xff]  }
 0xbba   :  { %v3477_v0 = vld [vmem:[#allocation12 + $0x20] sm:$0xff]   ;;  %v3479_v2 = vld [vmem:[#allocation12 + $0x18] sm:$0xff]  }
 0xbbb   :  { %v2166_v32 = vadd.f32 %v3467_v25, %v2926_v63  ;;  %2257 = vmatmul.mubr.bf16.vlgmr.msra.gmra.mxu0 %v2222_v30  ;;  %3235 = vmatprep.mubr.bf16.mxu1 %v2222_v30  ;;  %v2220_v56 = vmax.f32 %v2212_v31, 0.0  ;;  %v3481_v30 = vld [vmem:[#allocation12 + $0x10] sm:$0xff]   ;;  %v3482_v63 = vld [vmem:[%s4418_s11 + $0x8] sm:$0xff]  }
 0xbbc   :  { %2266 = vmatprep.mubr.bf16.mxu0 %v4481_v58  ;;  %v3483_v31 = vld [vmem:[#allocation12 + $0x8] sm:$0xff]  }
 0xbbd   :  { %v2215_v55 = vadd.f32 %v3218_v33, %v2166_v32  ;;  %v3484_v32 = vld [vmem:[%s4418_s11] sm:$0xff]  }
 0xbbf   :  { %v2221_v41 = vmax.f32 %v2215_v55, 0.0  ;;  %v3485_v55 = vld [vmem:[#allocation12] sm:$0xff]  }
 0xbc1   :  { %v2223_v62 = vpack.c.bf16 %v2221_v41, %v2220_v56 }
 0xbc3   :  { %2267 = vmatmul.mubr.bf16.gmra.mxu0 %v2223_v62  ;;  %3236 = vmatmul.mubr.bf16.vlgmr.msra.gmra.mxu1 %v2223_v62 }
 0xbc4   :  { %3243 = vmatprep.mubr.msk.bf16.mxu1 %vm3674_vm1, %v4482_v42  ;;  %3251 = vmatprep.mubr.msk.bf16.mxu0 %vm3674_vm1, %v4482_v42 }
 0xc7b   :  { %v2258_v45 = vpop.f32.mrf.mxu0 }
 0xc7c   :  { %v2259_v18 = vadd.f32 %v2258_v45, %v4022_v60 }
 0xc7d   :  { %v2260_v59 = vpop.f32.mrf.mxu0 }
 0xc7e   :  { %v2261_v49 = vadd.f32 %v2260_v59, %v4016_v47  ;;  %v2326_v34 = vmax.f32 %v2259_v18, 0.0 }
 0xc7f   :  { %v2262_v48 = vpop.f32.mrf.mxu0 }
 0xc80   :  { %v2327_v4 = vmax.f32 %v2261_v49, 0.0  ;;  %v2263_v44 = vadd.f32 %v2262_v48, %v4022_v60 }
 0xc81   :  { %v2264_v5 = vpop.f32.mrf.mxu0 }
 0xc82   :  { %2516 = vst [vmem:[#allocation15] sm:$0xff] %v2327_v4  ;;  %v2265_v58 = vadd.f32 %v2264_v5, %v4016_v47  ;;  %v2329_v23 = vmax.f32 %v2263_v44, 0.0 }
 0xc83   :  { %v2268_v6 = vpop.f32.mrf.mxu0  ;;  %v3237_v7 = vpop.f32.mrf.mxu1 }
 0xc84   :  { %v2330_v3 = vmax.f32 %v2265_v58, 0.0  ;;  %v2269_v8 = vadd.f32 %v2268_v6, %v4022_v60  ;;  %v2320_v9 = vadd.f32 %v3237_v7, %v4019_v54  ;;  %v2338_v35 = vpack.c.bf16 %v2329_v23, %v2326_v34 }
 0xc85   :  { %v2270_v10 = vpop.f32.mrf.mxu0  ;;  %v2311_v11 = vpop.f32.mrf.mxu1 }
 0xc86   :  { %2517 = vst [vmem:[#allocation15 + $0x8] sm:$0xff] %v2330_v3  ;;  %v2271_v12 = vadd.f32 %v2270_v10, %v4016_v47  ;;  %v2332_v19 = vmax.f32 %v2269_v8, 0.0  ;;  %v2334_v20 = vmax.f32 %v2320_v9, 0.0  ;;  %v2312_v22 = vadd.f32 %v2311_v11, %v4019_v54  ;;  %v3486_v9 = vld [vmem:[%s4419_s12] ss:$0 sm:$0xff] }
 0xc87   :  { %v2272_v13 = vpop.f32.mrf.mxu0  ;;  %v3238_v14 = vpop.f32.mrf.mxu1 }
 0xc88   :  { %v2333_v15 = vmax.f32 %v2271_v12, 0.0  ;;  %v2273_v16 = vadd.f32 %v2272_v13, %v4022_v60  ;;  %v2323_v17 = vadd.f32 %v3238_v14, %v4019_v54  ;;  %v2328_v60 = vmax.f32 %v2312_v22, 0.0 }
 0xc89   :  { %v2274_v26 = vpop.f32.mrf.mxu0  ;;  %v2314_v27 = vpop.f32.mrf.mxu1 }
 0xc8a   :  { %2518 = vst [vmem:[#allocation15 + $0x10] sm:$0xff] %v2333_v15  ;;  %v2335_v29 = vmax.f32 %v2273_v16, 0.0  ;;  %v2337_v53 = vmax.f32 %v2323_v17, 0.0  ;;  %v2275_v21 = vadd.f32 %v2274_v26, %v4016_v47  ;;  %v2315_v24 = vadd.f32 %v2314_v27, %v4019_v54  ;;  %v3468_v47 = vld [vmem:[#allocation6] sm:$0xff]   ;;  %v3469_v54 = vld [vmem:[#allocation3] sm:$0xff]  }
 0xc8c   :  { %v2339_v46 = vpack.c.bf16 %v2335_v29, %v2332_v19  ;;  %v2341_v25 = vpack.c.bf16 %v2337_v53, %v2334_v20  ;;  %v2336_v28 = vmax.f32 %v2275_v21, 0.0  ;;  %v2331_v33 = vmax.f32 %v2315_v24, 0.0 }
 0xc8e   :  { %2519 = vst [vmem:[#allocation15 + $0x18] sm:$0xff] %v2336_v28  ;;  %3240 = vmatpush3.bf16.msra.mxu1 %v2341_v25  ;;  %3248 = vmatpush3.bf16.msra.mxu0 %v2339_v46  ;;  %v2340_v36 = vpack.c.bf16 %v2331_v33, %v2328_v60 }
 0xc8f   :  { %3241 = vmatprep.subr.bf16.mxu1 %v4482_v42  ;;  %3249 = vmatprep.subr.bf16.mxu0 %v4482_v42 }
 0xc92   :  { %3242 = vmatpush3.bf16.msra.mxu1 %v2340_v36  ;;  %3250 = vmatpush3.bf16.msra.mxu0 %v2338_v35 }
 0xc93   :  { %3255 = vmatprep.subr.bf16.mxu1 %v4482_v42  ;;  %3275 = vmatprep.subr.bf16.mxu0 %v4482_v42 }
 0xc95   :  { %3244 = vmatmul.mubr.msk.bf16.vlgmr.msra.gmra.mxu1 %vm1026_vm2, %v3468_v47  ;;  %3252 = vmatmul.mubr.msk.bf16.vlgmr.msra.gmra.mxu0 %vm1026_vm2, %v3469_v54 }
 0xc96   :  { %3256 = vmatpush3.bf16.msra.mxu1 %v3470_v37  ;;  %3271 = vmatprep.mubr.msk.bf16.mxu1 %vm3674_vm1, %v4482_v42 }
 0xc97   :  { %3257 = vmatprep.subr.bf16.mxu1 %v4482_v42  ;;  %3276 = vmatpush3.bf16.msra.mxu0 %v3471_v38 }
 0xc98   :  { %3277 = vmatprep.subr.bf16.mxu0 %v4482_v42  ;;  %3291 = vmatprep.mubr.msk.bf16.mxu0 %vm3674_vm1, %v4482_v42 }
 0xc9a   :  { %3258 = vmatpush3.bf16.msra.mxu1 %v3472_v43 }
 0xc9b   :  { %3259 = vmatprep.subr.bf16.mxu1 %v4482_v42  ;;  %3278 = vmatpush3.bf16.msra.mxu0 %v3473_v39 }
 0xc9c   :  { %3279 = vmatprep.subr.bf16.mxu0 %v4482_v42 }
 0xc9e   :  { %3260 = vmatpush3.bf16.msra.mxu1 %v3474_v40 }
 0xc9f   :  { %3261 = vmatprep.subr.bf16.mxu1 %v4482_v42  ;;  %3280 = vmatpush3.bf16.msra.mxu0 %v3475_v57 }
 0xca0   :  { %3281 = vmatprep.subr.bf16.mxu0 %v4482_v42 }
 0xca2   :  { %3262 = vmatpush3.bf16.msra.mxu1 %v3476_v61 }
 0xca3   :  { %3263 = vmatprep.subr.bf16.mxu1 %v4482_v42  ;;  %3282 = vmatpush3.bf16.msra.mxu0 %v3477_v0 }
 0xca4   :  { %3283 = vmatprep.subr.bf16.mxu0 %v4482_v42 }
 0xca6   :  { %3264 = vmatpush3.bf16.msra.mxu1 %v3478_v50 }
 0xca7   :  { %3265 = vmatprep.subr.bf16.mxu1 %v4482_v42  ;;  %3284 = vmatpush3.bf16.msra.mxu0 %v3479_v2 }
 0xca8   :  { %3285 = vmatprep.subr.bf16.mxu0 %v4482_v42 }
 0xcaa   :  { %3266 = vmatpush3.bf16.msra.mxu1 %v3480_v52 }
 0xcab   :  { %3267 = vmatprep.subr.bf16.mxu1 %v4482_v42  ;;  %3286 = vmatpush3.bf16.msra.mxu0 %v3481_v30 }
 0xcac   :  { %3287 = vmatprep.subr.bf16.mxu0 %v4482_v42 }
 0xcae   :  { %3268 = vmatpush3.bf16.msra.mxu1 %v3482_v63 }
 0xcaf   :  { %3269 = vmatprep.subr.bf16.mxu1 %v4482_v42  ;;  %3288 = vmatpush3.bf16.msra.mxu0 %v3483_v31 }
 0xcb0   :  { %3289 = vmatprep.subr.bf16.mxu0 %v4482_v42 }
 0xcb2   :  { %3270 = vmatpush3.bf16.msra.mxu1 %v3484_v32 }
 0xcb3   :  { %3290 = vmatpush3.bf16.msra.mxu0 %v3485_v55 }
 0xd55   :  { %v2376_v56 = vpop.f32.mrf.mxu1  ;;  %v2417_v41 = vpop.f32.mrf.mxu0 }
 0xd56   :  { %v2418_v59 = vadd.f32 %v2417_v41, %v2376_v56 }
 0xd57   :  { %v3245_v62 = vpop.f32.mrf.mxu1  ;;  %v3253_v45 = vpop.f32.mrf.mxu0 }
 0xd58   :  { %v2424_v6 = vmul.f32 %v2418_v59, %v4125_v51 }
 0xd59   :  { %v2379_v49 = vpop.f32.mrf.mxu1  ;;  %v2420_v48 = vpop.f32.mrf.mxu0 }
 0xd5a   :  { %v2421_v4 = vadd.f32 %v2420_v48, %v2379_v49 }
 0xd5b   :  { %v3246_v5 = vpop.f32.mrf.mxu1  ;;  %v3254_v58 = vpop.f32.mrf.mxu0 }
 0xd5c   :  { %v2425_v42 = vmul.f32 %v2421_v4, %v4517_v1 }
 0xd5e   :  { %v2426_v7 = vpack.c.bf16 %v2425_v42, %v2424_v6 }
 0xd60   :  { %3272 = vmatmul.mubr.bf16.vlgmr.msra.gmra.mxu1 %v2426_v7 }
 0xe20   :  { %v2461_v3 = vpop.f32.mrf.mxu1 }
 0xe21   :  { %v2462_v10 = vadd.f32 %v3486_v9, %v2461_v3 }
 0xe22   :  { %v3273_v8 = vpop.f32.mrf.mxu1 }
 0xe23   :  { %v2468_v13 = vmax.f32 %v2462_v10, 0.0 }
 0xe24   :  { %v2464_v11 = vpop.f32.mrf.mxu1 }
 0xe25   :  { %v2465_v12 = vadd.f32 %v3486_v9, %v2464_v11 }
 0xe26   :  { %v3274_v44 = vpop.f32.mrf.mxu1 }
 0xe27   :  { %v2469_v14 = vmax.f32 %v2465_v12, 0.0 }
 0xe29   :  { %v2470_v15 = vpack.c.bf16 %v2469_v14, %v2468_v13 }
 0xe2b   :  { %3292 = vmatmul.mubr.bf16.vlgmr.msra.gmra.mxu0 %v2470_v15 }
 0xe2c   :  { %3619 = shalt.err (!%p3616_p6)
}
 0xe2d   :  { %2543 = dma.vmem_to_hbm [thread:$0]  %s2538_s28, 512, %s4423_s16, [#allocation16], %s3666_s24, %s3666_s24, %s3667_s25  }
 0xe2e   :  { %v3487_v1 = vld [vmem:[%s4421_s14] ss:$0 sm:$0xff]  ;;  %s3676_s13 = smov [#allocation14]  }
 0xe2f   :  { %s2525_s8 = sshll.u32 %s3676_s13, 4  ;;  %s2526_s8 = int_to_ptr.vmem [resolvable:$true] %s2525_s8 }
 0xe30   :  { %s3628_s26 = scalar_lea.vmem %s2526_s8, 256  ;;  %p3633_p8 = scmp.lt.s32.totalorder %s2526_s8, %s2526_s8 }
 0xe31   :  { %p3629_p7 = scmp.ne.s32.totalorder %s2526_s8, %s3628_s26  ;;  %p3634_p9 = scmp.lt.s32.totalorder %s3628_s26, %s3628_s26 }
 0xe33   :  { %p3635_p10 = por %p3634_p9, %p3633_p8 }
 0xe35   :  { %p3636_p11 = pnand %p3635_p10, %p3629_p7 }
 0xeeb   :  { %v2505_v51 = vpop.f32.mrf.mxu0 }
 0xeec   :  { %v2506_v16 = vadd.f32 %v3487_v1, %v2505_v51 }
 0xeed   :  { %v3293_v17 = vpop.f32.mrf.mxu0 }
 0xeee   :  { %v2512_v18 = vmax.f32 %v2506_v16, 0.0 }
 0xeef   :  { %v2508_v19 = vpop.f32.mrf.mxu0 }
 0xef0   :  { %2514 = vst [vmem:[#allocation14] sm:$0xff] %v2512_v18  ;;  %v2509_v20 = vadd.f32 %v3487_v1, %v2508_v19 }
 0xef1   :  { %v3294_v22 = vpop.f32.mrf.mxu0 }
 0xef2   :  { %v2513_v26 = vmax.f32 %v2509_v20, 0.0 }
 0xef4   :  { %2515 = vst [vmem:[#allocation14 + $0x8] sm:$0xff] %v2513_v26 }
 0xef5   :  { %3639 = shalt.err (!%p3636_p11)
}
 0xef6   :  { %2531 = dma.vmem_to_hbm [thread:$0]  %s2526_s8, 256, %s4422_s15, [#allocation5], %s3666_s24, %s3666_s24, %s3667_s25  }
 0xef7   :  { %3656 = dma.done.wait [#allocation5], 256  }
 0xef8   :  { %3657 = vsyncadd [#allocation5], 4294967040 }
 0xef9   :  { %3658 = dma.done.wait [#allocation16], 512  }
 0xefa   :  { %3659 = vsyncadd [#allocation16], 4294966784 }
 0xefb   :  { %2550 = vsyncpa [#allocation4], 1 }
 0xefc   :  { %2551 = vsyncpa [#allocation7], 1 }
 0xefd   :  { %2552 = vsyncpa [#allocation10], 1 }
 0xefe   :  { %2553 = vsyncpa [#allocation13], 1 }
 0xeff   :  { %2554 = vsyncpa [#allocation5], 1 }
 0xf00   :  { %2555 = vsyncpa [#allocation16], 1 }

</bundles_post_ra>
